<compile_context>
chip_gen: v6e
topology: v6e:2x2x1
jax: 0.10.0
libtpu: 0.0.40
codegen_flags: <defaults>
</compile_context>

<pallas_src>
import jax
import jax.numpy as jnp
from jax.experimental import pallas as pl
from jax.experimental.pallas import tpu as pltpu

CPAD = 128  # lane-dense padded out-channel width for every matmul


# ----------------------------------------------------------------------------
# Tiling helper
# ----------------------------------------------------------------------------
def _ru(a, b):
    return -(-a // b) * b


def _tile_rows(m, cap=1024):
    """Row tile (multiple of 8, <= cap) and padded row count (multiple of tile).

    Prefers >= 2 grid steps when there are enough rows so a 'parallel' grid
    axis can be sharded across both v7x TensorCores.
    """
    m8 = _ru(m, 8)
    if m8 <= 8:
        return m8, m8
    n_steps = max(2, -(-m8 // cap))
    tm = _ru(-(-m8 // n_steps), 8)
    return tm, _ru(m8, tm)


# ----------------------------------------------------------------------------
# Pallas kernels
# ----------------------------------------------------------------------------
def conv_pool_kernel(p00_ref, p01_ref, p10_ref, p11_ref, w_ref, b_ref, o_ref):
    """relu(max_q(q @ w) + b): conv + bias + ReLU + 2x2 maxpool, fused.

    Each p** block holds the im2col rows for one position inside every 2x2
    pooling window, so the pool is an elementwise max of four MXU results
    (bias-add and ReLU commute with max).  Math in f32, store bf16.
    Padded rows only ever pair with padded rows (same row index in all four
    quadrant slabs), so padding never contaminates real outputs.
    """
    w = w_ref[...]
    acc = jnp.dot(p00_ref[...], w, preferred_element_type=jnp.float32)
    acc = jnp.maximum(acc, jnp.dot(p01_ref[...], w, preferred_element_type=jnp.float32))
    acc = jnp.maximum(acc, jnp.dot(p10_ref[...], w, preferred_element_type=jnp.float32))
    acc = jnp.maximum(acc, jnp.dot(p11_ref[...], w, preferred_element_type=jnp.float32))
    o_ref[...] = jnp.maximum(acc + b_ref[...], 0.0).astype(o_ref.dtype)


def fc_fused_kernel(x_ref, w1_ref, b1_ref, w2_ref, b2_ref, o_ref):
    """relu(relu(x @ w1 + b1) @ w2 + b2); hidden activation never leaves VMEM."""
    h = jnp.dot(x_ref[...], w1_ref[...], preferred_element_type=jnp.float32)
    h = jnp.maximum(h + b1_ref[...], 0.0).astype(jnp.bfloat16)
    o = jnp.dot(h, w2_ref[...], preferred_element_type=jnp.float32)
    o_ref[...] = jnp.maximum(o + b2_ref[...], 0.0).astype(o_ref.dtype)


# ----------------------------------------------------------------------------
# Pallas wrappers
# ----------------------------------------------------------------------------
def conv_pool(quads, w_bf16, b_f32, tile_cap=1024):
    """Fused conv(+bias+ReLU)+2x2 maxpool over 4 quadrant patch slabs.

    quads: list of 4 arrays (M, K) bf16 (one im2col slab per pool-quadrant).
    Returns (M, 128) bf16, rows = pooled spatial positions, lanes = padded
    out-channels (lane-dense stores).
    """
    M, K = quads[0].shape
    Np = w_bf16.shape[1]
    tm, m_pad = _tile_rows(M, tile_cap)
    if m_pad != M:
        quads = [jnp.pad(q, ((0, m_pad - M), (0, 0))) for q in quads]
    cost = pl.CostEstimate(
        flops=2 * 4 * m_pad * K * Np,
        transcendentals=0,
        bytes_accessed=4 * m_pad * K * 2 + K * Np * 2 + Np * 4 + m_pad * Np * 2,
    )
    out = pl.pallas_call(
        conv_pool_kernel,
        out_shape=jax.ShapeDtypeStruct((m_pad, Np), jnp.bfloat16),
        grid=(m_pad // tm,),
        in_specs=[pl.BlockSpec((tm, K), lambda i: (i, 0))] * 4 + [
            pl.BlockSpec((K, Np), lambda i: (0, 0)),
            pl.BlockSpec((1, Np), lambda i: (0, 0)),
        ],
        out_specs=pl.BlockSpec((tm, Np), lambda i: (i, 0)),
        compiler_params=pltpu.CompilerParams(dimension_semantics=("parallel",)),
        cost_estimate=cost,
    )(*quads, w_bf16, b_f32)
    return out[:M] if m_pad != M else out


def fc_fused(x_bf16, w1, b1, w2, b2, tile_cap=512):
    """relu(relu(x @ w1 + b1) @ w2 + b2) in a single pallas_call."""
    M, K = x_bf16.shape
    Np = w1.shape[1]
    tm, m_pad = _tile_rows(M, tile_cap)
    if m_pad != M:
        x_bf16 = jnp.pad(x_bf16, ((0, m_pad - M), (0, 0)))
    cost = pl.CostEstimate(
        flops=2 * m_pad * K * Np + 2 * m_pad * Np * Np,
        transcendentals=0,
        bytes_accessed=(m_pad * K * 2 + K * Np * 2 + Np * Np * 2
                        + 2 * Np * 4 + m_pad * Np * 4),
    )
    out = pl.pallas_call(
        fc_fused_kernel,
        out_shape=jax.ShapeDtypeStruct((m_pad, Np), jnp.float32),
        grid=(m_pad // tm,),
        in_specs=[
            pl.BlockSpec((tm, K), lambda i: (i, 0)),
            pl.BlockSpec((K, Np), lambda i: (0, 0)),
            pl.BlockSpec((1, Np), lambda i: (0, 0)),
            pl.BlockSpec((Np, Np), lambda i: (0, 0)),
            pl.BlockSpec((1, Np), lambda i: (0, 0)),
        ],
        out_specs=pl.BlockSpec((tm, Np), lambda i: (i, 0)),
        compiler_params=pltpu.CompilerParams(dimension_semantics=("parallel",)),
        cost_estimate=cost,
    )(x_bf16, w1, b1, w2, b2)
    return out[:M] if m_pad != M else out


# ----------------------------------------------------------------------------
# Parameters (PyTorch layout) and one-time prep (reorder / pad / bf16 cast)
# ----------------------------------------------------------------------------
def init_params(seed=0):
    key = jax.random.PRNGKey(seed)
    ks = jax.random.split(key, 8)
    s = 0.1
    return {
        "conv1_w": jax.random.normal(ks[0], (10, 1, 5, 5), jnp.float32) * s,
        "conv1_b": jax.random.normal(ks[1], (10,), jnp.float32) * s,
        "conv2_w": jax.random.normal(ks[2], (20, 10, 5, 5), jnp.float32) * s,
        "conv2_b": jax.random.normal(ks[3], (20,), jnp.float32) * s,
        "fc1_w": jax.random.normal(ks[4], (50, 320), jnp.float32) * s,
        "fc1_b": jax.random.normal(ks[5], (50,), jnp.float32) * s,
        "fc2_w": jax.random.normal(ks[6], (10, 50), jnp.float32) * s,
        "fc2_b": jax.random.normal(ks[7], (10,), jnp.float32) * s,
    }


def _pad_cols(a, n):
    return jnp.pad(a, ((0, 0), (0, n - a.shape[1])))


def prepare_params(params):
    """Hoisted one-time weight prep.

    - conv weights flattened to match the XLA im2col row order exactly
      (conv1: dy*5+dx; conv2: (dy*5+dx)*10+c) -> no runtime patch transposes.
    - out-channel dim zero-padded to 128 (lane-dense matmul outputs).
    - fc1 weights remapped from torch's (c, h, w) flatten order to the kernel's
      pooled (h, w, c_pad128) layout so the flatten before fc is a free reshape.
    - matmul weights cast to bf16; biases stay f32 (f32 epilogue math).
    """
    w1 = params["conv1_w"].reshape(10, 25).T                        # (25, 10), rows dy*5+dx
    w2 = params["conv2_w"].transpose(2, 3, 1, 0).reshape(250, 20)   # rows (dy*5+dx)*10+c
    f1 = params["fc1_w"].T.reshape(20, 4, 4, 50).transpose(1, 2, 0, 3)   # (4,4,20,50): (h,w,c)
    f1_big = jnp.zeros((16, CPAD, CPAD), jnp.float32)
    f1_big = f1_big.at[:, :20, :50].set(f1.reshape(16, 20, 50))
    f2 = jnp.zeros((CPAD, CPAD), jnp.float32).at[:50, :10].set(params["fc2_w"].T)
    return {
        "w1": _pad_cols(w1, CPAD).astype(jnp.bfloat16),             # (25, 128)
        "b1": _pad_cols(params["conv1_b"][None, :], CPAD),          # (1, 128) f32
        "w2": _pad_cols(w2, CPAD).astype(jnp.bfloat16),             # (250, 128)
        "b2": _pad_cols(params["conv2_b"][None, :], CPAD),
        "f1": f1_big.reshape(16 * CPAD, CPAD).astype(jnp.bfloat16), # (2048, 128)
        "fb1": _pad_cols(params["fc1_b"][None, :], CPAD),
        "f2": f2.astype(jnp.bfloat16),                              # (128, 128)
        "fb2": _pad_cols(params["fc2_b"][None, :], CPAD),
    }


# ----------------------------------------------------------------------------
# Forward pass
# ----------------------------------------------------------------------------
def digitsum_image_phi_forward(prep, x_nchw):
    """DigitSumImagePhi forward. x_nchw: (N, 1, 28, 28) float32 -> (N, 10) f32."""
    N = x_nchw.shape[0]
    img = x_nchw.astype(jnp.bfloat16)[:, 0]                        # (N, 28, 28)

    # --- conv1 (1->10, k=5) + ReLU + 2x2 maxpool, one fused pallas_call ------
    # im2col (XLA): cols1[n, oh, ow, dy*5+dx] = img[n, oh+dy, ow+dx]
    cols1 = jnp.stack(
        [img[:, dy:dy + 24, dx:dx + 24] for dy in range(5) for dx in range(5)],
        axis=-1)                                                   # (N, 24, 24, 25)
    q1 = [cols1[:, qh::2, qw::2, :].reshape(N * 144, 25)
          for qh in (0, 1) for qw in (0, 1)]                       # 4 x (N*144, 25)
    y1p = conv_pool(q1, prep["w1"], prep["b1"], tile_cap=2048)     # (N*144, 128) bf16
    y1p = y1p.reshape(N, 12, 12, CPAD)[..., :10]                   # (N, 12, 12, 10) NHWC

    # --- conv2 (10->20, k=5) + ReLU + (eval dropout) + 2x2 maxpool, fused -----
    # im2col (XLA): cols2[n, oh, ow, dy*5+dx, c] = y1p[n, oh+dy, ow+dx, c]
    # -> row-inner order (dy, dx, c) matches prep["w2"]; no runtime transpose.
    cols2 = jnp.stack(
        [y1p[:, dy:dy + 8, dx:dx + 8, :] for dy in range(5) for dx in range(5)],
        axis=3)                                                    # (N, 8, 8, 25, 10)
    q2 = [cols2[:, qh::2, qw::2].reshape(N * 16, 250)
          for qh in (0, 1) for qw in (0, 1)]                       # 4 x (N*16, 250)
    y2p = conv_pool(q2, prep["w2"], prep["b2"], tile_cap=1024)     # (N*16, 128) bf16

    # --- fc1 + ReLU + fc2 + ReLU fused (dropout_fc2 identity in eval mode) ----
    # Free reshape: fc1 weights were remapped to this (h, w, c_pad128) layout
    # (padded channels carry zero weights and zero activations).
    flat = y2p.reshape(N, 16 * CPAD)                               # (N, 2048) bf16
    out = fc_fused(flat, prep["f1"], prep["fb1"], prep["f2"], prep["fb2"],
                   tile_cap=512)
    return out[:, :10]                                             # (N, 10) f32


# ----------------------------------------------------------------------------
# Pure-XLA f32 reference (PyTorch semantics) for a numerical sanity check
# ----------------------------------------------------------------------------
def reference_forward(params, x):
    dn = ("NCHW", "OIHW", "NCHW")
    y = jax.lax.conv_general_dilated(x, params["conv1_w"], (1, 1), "VALID",
                                     dimension_numbers=dn)
    y = jax.nn.relu(y + params["conv1_b"][None, :, None, None])
    y = jax.lax.reduce_window(y, -jnp.inf, jax.lax.max,
                              (1, 1, 2, 2), (1, 1, 2, 2), "VALID")
    y = jax.lax.conv_general_dilated(y, params["conv2_w"], (1, 1), "VALID",
                                     dimension_numbers=dn)
    y = jax.nn.relu(y + params["conv2_b"][None, :, None, None])
    y = jax.lax.reduce_window(y, -jnp.inf, jax.lax.max,
                              (1, 1, 2, 2), (1, 1, 2, 2), "VALID")
    y = y.reshape(y.shape[0], 320)
    y = jax.nn.relu(y @ params["fc1_w"].T + params["fc1_b"])
    y = jax.nn.relu(y @ params["fc2_w"].T + params["fc2_b"])
    return y


if __name__ == "__main__":
    key = jax.random.PRNGKey(0)
    # Input must be 28x28 single-channel so that the flatten yields 320 features.
    x = jax.random.normal(key, (2, 1, 28, 28), dtype=jnp.float32)
    params = init_params(seed=0)
    prep = prepare_params(params)          # one-time weight prep (hoisted)

    fwd = jax.jit(digitsum_image_phi_forward)
    out = fwd(prep, x)
    out = jax.block_until_ready(out)

    assert out.shape == (2, 10), out.shape
    assert out.dtype == jnp.float32
    assert bool(jnp.all(jnp.isfinite(out)))
    assert bool(jnp.all(out >= 0.0))       # final ReLU per the reference module

    # bf16 matmul path vs f32 reference: expect small drift only.
    ref = jax.block_until_ready(reference_forward(params, x))
    max_abs = float(jnp.max(jnp.abs(out - ref)))
    assert max_abs < 0.2, f"max abs diff vs f32 reference too large: {max_abs}"

    print("KERNEL_OK")
</pallas_src>

<mosaic_0001>
module attributes {stable_mosaic.version = 11 : i64} {
  func.func @conv_pool_kernel(%arg0: i32, %arg1: memref<144x25xbf16, #tpu.memory_space<vmem>>, %arg2: memref<144x25xbf16, #tpu.memory_space<vmem>>, %arg3: memref<144x25xbf16, #tpu.memory_space<vmem>>, %arg4: memref<144x25xbf16, #tpu.memory_space<vmem>>, %arg5: memref<25x128xbf16, #tpu.memory_space<vmem>>, %arg6: memref<1x128xf32, #tpu.memory_space<vmem>>, %arg7: memref<144x128xbf16, #tpu.memory_space<vmem>>) attributes {dimension_semantics = [#tpu.dimension_semantics<parallel>], iteration_bounds = array<i64: 2>, scalar_prefetch = 0 : i64, scratch_operands = 0 : i64, tpu.core_type = #tpu.core_type<tc>, window_params = [{transform_indices = @transform_0, window_bounds = array<i64: 144, 25>}, {transform_indices = @transform_1, window_bounds = array<i64: 144, 25>}, {transform_indices = @transform_2, window_bounds = array<i64: 144, 25>}, {transform_indices = @transform_3, window_bounds = array<i64: 144, 25>}, {pipeline_mode = #tpu.pipeline_mode<synchronous>, transform_indices = @transform_4, window_bounds = array<i64: 25, 128>}, {pipeline_mode = #tpu.pipeline_mode<synchronous>, transform_indices = @transform_5, window_bounds = array<i64: 1, 128>}, {transform_indices = @transform_6, window_bounds = array<i64: 144, 128>}]} {
    %c0 = arith.constant 0 : index
    %c0_0 = arith.constant 0 : index
    %0 = vector.load %arg5[%c0, %c0_0] : memref<25x128xbf16, #tpu.memory_space<vmem>>, vector<25x128xbf16>
    %c0_1 = arith.constant 0 : index
    %c0_2 = arith.constant 0 : index
    %1 = vector.load %arg1[%c0_1, %c0_2] : memref<144x25xbf16, #tpu.memory_space<vmem>>, vector<144x25xbf16>
    %cst = arith.constant dense<0.000000e+00> : vector<144x128xf32>
    %2 = tpu.matmul %1, %0, %cst {dimension_numbers = #tpu.dot_dimension_numbers<[1], [0], [0], [1], [0, 0, 1, 1], [], []>} : vector<144x25xbf16>, vector<25x128xbf16>, vector<144x128xf32> -> vector<144x128xf32>
    %c0_3 = arith.constant 0 : index
    %c0_4 = arith.constant 0 : index
    %3 = vector.load %arg2[%c0_3, %c0_4] : memref<144x25xbf16, #tpu.memory_space<vmem>>, vector<144x25xbf16>
    %cst_5 = arith.constant dense<0.000000e+00> : vector<144x128xf32>
    %4 = tpu.matmul %3, %0, %cst_5 {dimension_numbers = #tpu.dot_dimension_numbers<[1], [0], [0], [1], [0, 0, 1, 1], [], []>} : vector<144x25xbf16>, vector<25x128xbf16>, vector<144x128xf32> -> vector<144x128xf32>
    %5 = arith.maximumf %2, %4 : vector<144x128xf32>
    %c0_6 = arith.constant 0 : index
    %c0_7 = arith.constant 0 : index
    %6 = vector.load %arg3[%c0_6, %c0_7] : memref<144x25xbf16, #tpu.memory_space<vmem>>, vector<144x25xbf16>
    %cst_8 = arith.constant dense<0.000000e+00> : vector<144x128xf32>
    %7 = tpu.matmul %6, %0, %cst_8 {dimension_numbers = #tpu.dot_dimension_numbers<[1], [0], [0], [1], [0, 0, 1, 1], [], []>} : vector<144x25xbf16>, vector<25x128xbf16>, vector<144x128xf32> -> vector<144x128xf32>
    %8 = arith.maximumf %5, %7 : vector<144x128xf32>
    %c0_9 = arith.constant 0 : index
    %c0_10 = arith.constant 0 : index
    %9 = vector.load %arg4[%c0_9, %c0_10] : memref<144x25xbf16, #tpu.memory_space<vmem>>, vector<144x25xbf16>
    %cst_11 = arith.constant dense<0.000000e+00> : vector<144x128xf32>
    %10 = tpu.matmul %9, %0, %cst_11 {dimension_numbers = #tpu.dot_dimension_numbers<[1], [0], [0], [1], [0, 0, 1, 1], [], []>} : vector<144x25xbf16>, vector<25x128xbf16>, vector<144x128xf32> -> vector<144x128xf32>
    %11 = arith.maximumf %8, %10 : vector<144x128xf32>
    %c0_12 = arith.constant 0 : index
    %c0_13 = arith.constant 0 : index
    %12 = vector.load %arg6[%c0_12, %c0_13] : memref<1x128xf32, #tpu.memory_space<vmem>>, vector<1x128xf32>
    %13 = vector.broadcast %12 : vector<1x128xf32> to vector<144x128xf32>
    %14 = arith.addf %11, %13 : vector<144x128xf32>
    %cst_14 = arith.constant 0.000000e+00 : f32
    %15 = vector.broadcast %cst_14 : f32 to vector<144x128xf32>
    %16 = arith.maximumf %14, %15 : vector<144x128xf32>
    %17 = arith.truncf %16 : vector<144x128xf32> to vector<144x128xbf16>
    %c0_15 = arith.constant 0 : index
    %c0_16 = arith.constant 0 : index
    %18 = vector.load %arg7[%c0_15, %c0_16] : memref<144x128xbf16, #tpu.memory_space<vmem>>, vector<144x128xbf16>
    tpu.vector_store %arg7[%c0_15, %c0_16], %17 {strides = array<i32>} : memref<144x128xbf16, #tpu.memory_space<vmem>>, vector<144x128xbf16>,
    return
  }
  func.func @transform_0(%arg0: i32) -> (i32, i32) {
    %c0_i32 = arith.constant 0 : i32
    %c0_i32_0 = arith.constant 0 : i32
    return %arg0, %c0_i32 : i32, i32
  }
  func.func @transform_1(%arg0: i32) -> (i32, i32) {
    %c0_i32 = arith.constant 0 : i32
    %c0_i32_0 = arith.constant 0 : i32
    return %arg0, %c0_i32 : i32, i32
  }
  func.func @transform_2(%arg0: i32) -> (i32, i32) {
    %c0_i32 = arith.constant 0 : i32
    %c0_i32_0 = arith.constant 0 : i32
    return %arg0, %c0_i32 : i32, i32
  }
  func.func @transform_3(%arg0: i32) -> (i32, i32) {
    %c0_i32 = arith.constant 0 : i32
    %c0_i32_0 = arith.constant 0 : i32
    return %arg0, %c0_i32 : i32, i32
  }
  func.func @transform_4(%arg0: i32) -> (i32, i32) {
    %c0_i32 = arith.constant 0 : i32
    %c0_i32_0 = arith.constant 0 : i32
    %c0_i32_1 = arith.constant 0 : i32
    return %c0_i32, %c0_i32_0 : i32, i32
  }
  func.func @transform_5(%arg0: i32) -> (i32, i32) {
    %c0_i32 = arith.constant 0 : i32
    %c0_i32_0 = arith.constant 0 : i32
    %c0_i32_1 = arith.constant 0 : i32
    return %c0_i32, %c0_i32_0 : i32, i32
  }
  func.func @transform_6(%arg0: i32) -> (i32, i32) {
    %c0_i32 = arith.constant 0 : i32
    %c0_i32_0 = arith.constant 0 : i32
    return %arg0, %c0_i32 : i32, i32
  }
}

module attributes {stable_mosaic.version = 11 : i64} {
  func.func @conv_pool_kernel(%arg0: i32, %arg1: memref<16x250xbf16, #tpu.memory_space<vmem>>, %arg2: memref<16x250xbf16, #tpu.memory_space<vmem>>, %arg3: memref<16x250xbf16, #tpu.memory_space<vmem>>, %arg4: memref<16x250xbf16, #tpu.memory_space<vmem>>, %arg5: memref<250x128xbf16, #tpu.memory_space<vmem>>, %arg6: memref<1x128xf32, #tpu.memory_space<vmem>>, %arg7: memref<16x128xbf16, #tpu.memory_space<vmem>>) attributes {dimension_semantics = [#tpu.dimension_semantics<parallel>], iteration_bounds = array<i64: 2>, scalar_prefetch = 0 : i64, scratch_operands = 0 : i64, tpu.core_type = #tpu.core_type<tc>, window_params = [{transform_indices = @transform_0, window_bounds = array<i64: 16, 250>}, {transform_indices = @transform_1, window_bounds = array<i64: 16, 250>}, {transform_indices = @transform_2, window_bounds = array<i64: 16, 250>}, {transform_indices = @transform_3, window_bounds = array<i64: 16, 250>}, {pipeline_mode = #tpu.pipeline_mode<synchronous>, transform_indices = @transform_4, window_bounds = array<i64: 250, 128>}, {pipeline_mode = #tpu.pipeline_mode<synchronous>, transform_indices = @transform_5, window_bounds = array<i64: 1, 128>}, {transform_indices = @transform_6, window_bounds = array<i64: 16, 128>}]} {
    %c0 = arith.constant 0 : index
    %c0_0 = arith.constant 0 : index
    %0 = vector.load %arg5[%c0, %c0_0] : memref<250x128xbf16, #tpu.memory_space<vmem>>, vector<250x128xbf16>
    %c0_1 = arith.constant 0 : index
    %c0_2 = arith.constant 0 : index
    %1 = vector.load %arg1[%c0_1, %c0_2] : memref<16x250xbf16, #tpu.memory_space<vmem>>, vector<16x250xbf16>
    %cst = arith.constant dense<0.000000e+00> : vector<16x128xf32>
    %2 = tpu.matmul %1, %0, %cst {dimension_numbers = #tpu.dot_dimension_numbers<[1], [0], [0], [1], [0, 0, 1, 1], [], []>} : vector<16x250xbf16>, vector<250x128xbf16>, vector<16x128xf32> -> vector<16x128xf32>
    %c0_3 = arith.constant 0 : index
    %c0_4 = arith.constant 0 : index
    %3 = vector.load %arg2[%c0_3, %c0_4] : memref<16x250xbf16, #tpu.memory_space<vmem>>, vector<16x250xbf16>
    %cst_5 = arith.constant dense<0.000000e+00> : vector<16x128xf32>
    %4 = tpu.matmul %3, %0, %cst_5 {dimension_numbers = #tpu.dot_dimension_numbers<[1], [0], [0], [1], [0, 0, 1, 1], [], []>} : vector<16x250xbf16>, vector<250x128xbf16>, vector<16x128xf32> -> vector<16x128xf32>
    %5 = arith.maximumf %2, %4 : vector<16x128xf32>
    %c0_6 = arith.constant 0 : index
    %c0_7 = arith.constant 0 : index
    %6 = vector.load %arg3[%c0_6, %c0_7] : memref<16x250xbf16, #tpu.memory_space<vmem>>, vector<16x250xbf16>
    %cst_8 = arith.constant dense<0.000000e+00> : vector<16x128xf32>
    %7 = tpu.matmul %6, %0, %cst_8 {dimension_numbers = #tpu.dot_dimension_numbers<[1], [0], [0], [1], [0, 0, 1, 1], [], []>} : vector<16x250xbf16>, vector<250x128xbf16>, vector<16x128xf32> -> vector<16x128xf32>
    %8 = arith.maximumf %5, %7 : vector<16x128xf32>
    %c0_9 = arith.constant 0 : index
    %c0_10 = arith.constant 0 : index
    %9 = vector.load %arg4[%c0_9, %c0_10] : memref<16x250xbf16, #tpu.memory_space<vmem>>, vector<16x250xbf16>
    %cst_11 = arith.constant dense<0.000000e+00> : vector<16x128xf32>
    %10 = tpu.matmul %9, %0, %cst_11 {dimension_numbers = #tpu.dot_dimension_numbers<[1], [0], [0], [1], [0, 0, 1, 1], [], []>} : vector<16x250xbf16>, vector<250x128xbf16>, vector<16x128xf32> -> vector<16x128xf32>
    %11 = arith.maximumf %8, %10 : vector<16x128xf32>
    %c0_12 = arith.constant 0 : index
    %c0_13 = arith.constant 0 : index
    %12 = vector.load %arg6[%c0_12, %c0_13] : memref<1x128xf32, #tpu.memory_space<vmem>>, vector<1x128xf32>
    %13 = vector.broadcast %12 : vector<1x128xf32> to vector<16x128xf32>
    %14 = arith.addf %11, %13 : vector<16x128xf32>
    %cst_14 = arith.constant 0.000000e+00 : f32
    %15 = vector.broadcast %cst_14 : f32 to vector<16x128xf32>
    %16 = arith.maximumf %14, %15 : vector<16x128xf32>
    %17 = arith.truncf %16 : vector<16x128xf32> to vector<16x128xbf16>
    %c0_15 = arith.constant 0 : index
    %c0_16 = arith.constant 0 : index
    %18 = vector.load %arg7[%c0_15, %c0_16] : memref<16x128xbf16, #tpu.memory_space<vmem>>, vector<16x128xbf16>
    tpu.vector_store %arg7[%c0_15, %c0_16], %17 {strides = array<i32>} : memref<16x128xbf16, #tpu.memory_space<vmem>>, vector<16x128xbf16>,
    return
  }
  func.func @transform_0(%arg0: i32) -> (i32, i32) {
    %c0_i32 = arith.constant 0 : i32
    %c0_i32_0 = arith.constant 0 : i32
    return %arg0, %c0_i32 : i32, i32
  }
  func.func @transform_1(%arg0: i32) -> (i32, i32) {
    %c0_i32 = arith.constant 0 : i32
    %c0_i32_0 = arith.constant 0 : i32
    return %arg0, %c0_i32 : i32, i32
  }
  func.func @transform_2(%arg0: i32) -> (i32, i32) {
    %c0_i32 = arith.constant 0 : i32
    %c0_i32_0 = arith.constant 0 : i32
    return %arg0, %c0_i32 : i32, i32
  }
  func.func @transform_3(%arg0: i32) -> (i32, i32) {
    %c0_i32 = arith.constant 0 : i32
    %c0_i32_0 = arith.constant 0 : i32
    return %arg0, %c0_i32 : i32, i32
  }
  func.func @transform_4(%arg0: i32) -> (i32, i32) {
    %c0_i32 = arith.constant 0 : i32
    %c0_i32_0 = arith.constant 0 : i32
    %c0_i32_1 = arith.constant 0 : i32
    return %c0_i32, %c0_i32_0 : i32, i32
  }
  func.func @transform_5(%arg0: i32) -> (i32, i32) {
    %c0_i32 = arith.constant 0 : i32
    %c0_i32_0 = arith.constant 0 : i32
    %c0_i32_1 = arith.constant 0 : i32
    return %c0_i32, %c0_i32_0 : i32, i32
  }
  func.func @transform_6(%arg0: i32) -> (i32, i32) {
    %c0_i32 = arith.constant 0 : i32
    %c0_i32_0 = arith.constant 0 : i32
    return %arg0, %c0_i32 : i32, i32
  }
}

module attributes {stable_mosaic.version = 11 : i64} {
  func.func @fc_fused_kernel(%arg0: i32, %arg1: memref<8x2048xbf16, #tpu.memory_space<vmem>>, %arg2: memref<2048x128xbf16, #tpu.memory_space<vmem>>, %arg3: memref<1x128xf32, #tpu.memory_space<vmem>>, %arg4: memref<128x128xbf16, #tpu.memory_space<vmem>>, %arg5: memref<1x128xf32, #tpu.memory_space<vmem>>, %arg6: memref<8x128xf32, #tpu.memory_space<vmem>>) attributes {dimension_semantics = [#tpu.dimension_semantics<parallel>], iteration_bounds = array<i64: 1>, scalar_prefetch = 0 : i64, scratch_operands = 0 : i64, tpu.core_type = #tpu.core_type<tc>, window_params = [{transform_indices = @transform_0, window_bounds = array<i64: 8, 2048>}, {pipeline_mode = #tpu.pipeline_mode<synchronous>, transform_indices = @transform_1, window_bounds = array<i64: 2048, 128>}, {pipeline_mode = #tpu.pipeline_mode<synchronous>, transform_indices = @transform_2, window_bounds = array<i64: 1, 128>}, {pipeline_mode = #tpu.pipeline_mode<synchronous>, transform_indices = @transform_3, window_bounds = array<i64: 128, 128>}, {pipeline_mode = #tpu.pipeline_mode<synchronous>, transform_indices = @transform_4, window_bounds = array<i64: 1, 128>}, {transform_indices = @transform_5, window_bounds = array<i64: 8, 128>}]} {
    %c0 = arith.constant 0 : index
    %c0_0 = arith.constant 0 : index
    %0 = vector.load %arg1[%c0, %c0_0] : memref<8x2048xbf16, #tpu.memory_space<vmem>>, vector<8x2048xbf16>
    %c0_1 = arith.constant 0 : index
    %c0_2 = arith.constant 0 : index
    %1 = vector.load %arg2[%c0_1, %c0_2] : memref<2048x128xbf16, #tpu.memory_space<vmem>>, vector<2048x128xbf16>
    %cst = arith.constant dense<0.000000e+00> : vector<8x128xf32>
    %2 = tpu.matmul %0, %1, %cst {dimension_numbers = #tpu.dot_dimension_numbers<[1], [0], [0], [1], [0, 0, 1, 1], [], []>} : vector<8x2048xbf16>, vector<2048x128xbf16>, vector<8x128xf32> -> vector<8x128xf32>
    %c0_3 = arith.constant 0 : index
    %c0_4 = arith.constant 0 : index
    %3 = vector.load %arg3[%c0_3, %c0_4] : memref<1x128xf32, #tpu.memory_space<vmem>>, vector<1x128xf32>
    %4 = vector.broadcast %3 : vector<1x128xf32> to vector<8x128xf32>
    %5 = arith.addf %2, %4 : vector<8x128xf32>
    %cst_5 = arith.constant 0.000000e+00 : f32
    %6 = vector.broadcast %cst_5 : f32 to vector<8x128xf32>
    %7 = arith.maximumf %5, %6 : vector<8x128xf32>
    %8 = arith.truncf %7 : vector<8x128xf32> to vector<8x128xbf16>
    %c0_6 = arith.constant 0 : index
    %c0_7 = arith.constant 0 : index
    %9 = vector.load %arg4[%c0_6, %c0_7] : memref<128x128xbf16, #tpu.memory_space<vmem>>, vector<128x128xbf16>
    %cst_8 = arith.constant dense<0.000000e+00> : vector<8x128xf32>
    %10 = tpu.matmul %8, %9, %cst_8 {dimension_numbers = #tpu.dot_dimension_numbers<[1], [0], [0], [1], [0, 0, 1, 1], [], []>} : vector<8x128xbf16>, vector<128x128xbf16>, vector<8x128xf32> -> vector<8x128xf32>
    %c0_9 = arith.constant 0 : index
    %c0_10 = arith.constant 0 : index
    %11 = vector.load %arg5[%c0_9, %c0_10] : memref<1x128xf32, #tpu.memory_space<vmem>>, vector<1x128xf32>
    %12 = vector.broadcast %11 : vector<1x128xf32> to vector<8x128xf32>
    %13 = arith.addf %10, %12 : vector<8x128xf32>
    %cst_11 = arith.constant 0.000000e+00 : f32
    %14 = vector.broadcast %cst_11 : f32 to vector<8x128xf32>
    %15 = arith.maximumf %13, %14 : vector<8x128xf32>
    %c0_12 = arith.constant 0 : index
    %c0_13 = arith.constant 0 : index
    %16 = vector.load %arg6[%c0_12, %c0_13] : memref<8x128xf32, #tpu.memory_space<vmem>>, vector<8x128xf32>
    tpu.vector_store %arg6[%c0_12, %c0_13], %15 {strides = array<i32>} : memref<8x128xf32, #tpu.memory_space<vmem>>, vector<8x128xf32>,
    return
  }
  func.func @transform_0(%arg0: i32) -> (i32, i32) {
    %c0_i32 = arith.constant 0 : i32
    %c0_i32_0 = arith.constant 0 : i32
    return %arg0, %c0_i32 : i32, i32
  }
  func.func @transform_1(%arg0: i32) -> (i32, i32) {
    %c0_i32 = arith.constant 0 : i32
    %c0_i32_0 = arith.constant 0 : i32
    %c0_i32_1 = arith.constant 0 : i32
    return %c0_i32, %c0_i32_0 : i32, i32
  }
  func.func @transform_2(%arg0: i32) -> (i32, i32) {
    %c0_i32 = arith.constant 0 : i32
    %c0_i32_0 = arith.constant 0 : i32
    %c0_i32_1 = arith.constant 0 : i32
    return %c0_i32, %c0_i32_0 : i32, i32
  }
  func.func @transform_3(%arg0: i32) -> (i32, i32) {
    %c0_i32 = arith.constant 0 : i32
    %c0_i32_0 = arith.constant 0 : i32
    %c0_i32_1 = arith.constant 0 : i32
    return %c0_i32, %c0_i32_0 : i32, i32
  }
  func.func @transform_4(%arg0: i32) -> (i32, i32) {
    %c0_i32 = arith.constant 0 : i32
    %c0_i32_0 = arith.constant 0 : i32
    %c0_i32_1 = arith.constant 0 : i32
    return %c0_i32, %c0_i32_0 : i32, i32
  }
  func.func @transform_5(%arg0: i32) -> (i32, i32) {
    %c0_i32 = arith.constant 0 : i32
    %c0_i32_0 = arith.constant 0 : i32
    return %arg0, %c0_i32 : i32, i32
  }
}

</mosaic_0001>

<bundles_post_ra>
// kernel: digitsum_image_phi_forward.3
= control target key start
LH: loop header
LB: loop body
LE: loop exit
PB: predicated region body
PF: predicated region fallthrough
CT: control target
= control target key end

     0   :  { %s1879_s21 = smov 0   ;;  %s2274_s0 = inlined_call_operand.vmem [shape: bf16[288,25], index: 0, kind: input, shape index: {}]   ;;  %s2275_s1 = inlined_call_operand.vmem [shape: bf16[288,25], index: 1, kind: input, shape index: {}]   ;;  %s2276_s2 = inlined_call_operand.vmem [shape: bf16[288,25], index: 2, kind: input, shape index: {}]   ;;  %s2277_s3 = inlined_call_operand.vmem [shape: bf16[288,25], index: 3, kind: input, shape index: {}]   ;;  %s2278_s4 = inlined_call_operand.vmem [shape: bf16[25,128], index: 4, kind: input, shape index: {}]   ;;  %s2279_s5 = inlined_call_operand.vmem [shape: f32[1,128], index: 5, kind: input, shape index: {}]   ;;  %s2280_s6 = inlined_call_operand.vmem [shape: bf16[288,128], index: 6, kind: output, shape index: {}]  }
   0x1 LB: > { %s1404_s22 = sadd.s32 4294967295, %s1839_s21   ;;  %p1408_p0 = scmp.ge.s32.totalorder %s1839_s21, 1  ;;  %s1839_s21 = sphi %s1879_s21, %s16_s21  }
   0x2   : > { %p246_p1 = scmp.lt.s32.totalorder %s1839_s21, 3 }
   0x4   : > { %p247_p2 = pnand %p1408_p0, %p246_p1 }
   0x5   : > { %s291_s25 = smul.u32 (!%p247_p2), 18, %s1404_s22 }
   0x6   : > { %250 = sbr.rel (%p247_p2) target bundleno = 367 (0x16f), region = 44 }
   0x7   : > { %p292_p3 = scmp.lt.s32.totalorder (!%p247_p2), %s291_s25, 35 }
   0xb   : > { %vm428_vm0 = vcmask 1043456   ;;  %v1841_v0 = vmov 0.0   ;;  %v1795_v1 = vld [vmem:[%s2278_s4 + $0x8] sm:$0x1f]   ;;  %vm429_vm1 = vcmask 1044480   ;;  %v1842_v2 = vmov 65535  }
   0xc   : > { %1624 = vmatprep.subr.bf16.mxu0 %v1841_v0  ;;  %1664 = vmatprep.subr.bf16.mxu1 %v1841_v0  ;;  %v430_v3 = vsel %vm428_vm0, 4294967295, %v1842_v2  ;;  %vm1843_vm2 = vmmov 0   ;;  %v1796_v6 = vld [vmem:[%s2278_s4] sm:$0xff]   ;;  %s2287_s25 = smov (!%p292_p3, %s291_s25), 35  ;;  %vm400_vm3 = vcmask 203776  }
   0xd   : > { %v431_v4 = vsel %vm429_vm1, %v430_v3, 0  ;;  %1628 = vmatprep.mubr.msk.bf16.mxu0 %vm1843_vm2, %v1841_v0  ;;  %1668 = vmatprep.mubr.msk.bf16.mxu1 %vm1843_vm2, %v1841_v0  ;;  %s1901_s28 = sshll.u32 %s2287_s25, 2 }
   0xe   : > { %v433_v5 = vand.u32 %v1795_v1, %v431_v4  ;;  %s1907_s7 = scalar_lea.vmem %s2274_s0, %s1901_s28  ;;  %s1913_s10 = scalar_lea.vmem %s2275_s1, %s1901_s28 }
   0xf   : > { %v1797_v7 = vld [vmem:[%s1907_s7] sm:$0xff]   ;;  %v1799_v9 = vld [vmem:[%s1907_s7 + $0x8] sm:$0xff]   ;;  %v1801_v11 = vld [vmem:[%s1907_s7 + $0x10] sm:$0xff]   ;;  %s1941_s13 = scalar_lea.vmem %s2276_s2, %s1901_s28  ;;  %s1947_s16 = scalar_lea.vmem %s2277_s3, %s1901_s28 }
  0x10   : > { %1625 = vmatpush3.bf16.msra.mxu0 %v433_v5  ;;  %1665 = vmatpush3.bf16.msra.mxu1 %v433_v5  ;;  %v1798_v8 = vld [vmem:[%s1913_s10] sm:$0xff]   ;;  %v1800_v10 = vld [vmem:[%s1913_s10 + $0x8] sm:$0xff]   ;;  %v1802_v12 = vld [vmem:[%s1913_s10 + $0x10] sm:$0xff]   ;;  %s2199_s22 = scalar_lea.vmem %s2280_s6, %s1901_s28 }
  0x11   : > { %1626 = vmatprep.subr.bf16.mxu0 %v1841_v0  ;;  %1666 = vmatprep.subr.bf16.mxu1 %v1841_v0  ;;  %v1803_v13 = vld [vmem:[%s1907_s7 + $0x18] sm:$0xff]   ;;  %v1805_v15 = vld [vmem:[%s1907_s7 + $0x20] sm:$0xff]   ;;  %v1807_v17 = vld [vmem:[%s1907_s7 + $0x28] sm:$0xff]  }
  0x12   : > { %v1804_v14 = vld [vmem:[%s1913_s10 + $0x18] sm:$0xff]   ;;  %v1806_v16 = vld [vmem:[%s1913_s10 + $0x20] sm:$0xff]   ;;  %v1808_v18 = vld [vmem:[%s1913_s10 + $0x28] sm:$0xff]  }
  0x13   : > { %v1809_v19 = vld [vmem:[%s1907_s7 + $0x30] sm:$0xff]   ;;  %v1811_v21 = vld [vmem:[%s1907_s7 + $0x38] sm:$0xff]   ;;  %v1813_v23 = vld [vmem:[%s1907_s7 + $0x40] sm:$0xff]  }
  0x14   : > { %1627 = vmatpush3.bf16.msra.mxu0 %v1796_v6  ;;  %1667 = vmatpush3.bf16.msra.mxu1 %v1796_v6  ;;  %v1810_v20 = vld [vmem:[%s1913_s10 + $0x30] sm:$0xff]   ;;  %v1812_v22 = vld [vmem:[%s1913_s10 + $0x38] sm:$0xff]   ;;  %v1814_v24 = vld [vmem:[%s1913_s10 + $0x40] sm:$0xff]  }
  0x15   : > { %1704 = vmatprep.subr.bf16.mxu0 %v1841_v0  ;;  %1744 = vmatprep.subr.bf16.mxu1 %v1841_v0  ;;  %v1815_v25 = vld [vmem:[%s1941_s13] sm:$0xff]   ;;  %v1817_v27 = vld [vmem:[%s1941_s13 + $0x8] sm:$0xff]   ;;  %v1819_v29 = vld [vmem:[%s1941_s13 + $0x10] sm:$0xff]  }
  0x16   : > { %v1816_v26 = vld [vmem:[%s1947_s16] sm:$0xff]   ;;  %v1818_v28 = vld [vmem:[%s1947_s16 + $0x8] sm:$0xff]   ;;  %v1820_v30 = vld [vmem:[%s1947_s16 + $0x10] sm:$0xff]  }
  0x17   : > { %1629 = vmatmul.mubr.msk.bf16.vlgmr.msra.gmra.mxu0 %vm400_vm3, %v1797_v7  ;;  %1669 = vmatmul.mubr.msk.bf16.vlgmr.msra.gmra.mxu1 %vm400_vm3, %v1798_v8  ;;  %v1821_v31 = vld [vmem:[%s1941_s13 + $0x18] sm:$0xff]   ;;  %v1823_v33 = vld [vmem:[%s1941_s13 + $0x20] sm:$0xff]   ;;  %v1825_v35 = vld [vmem:[%s1941_s13 + $0x28] sm:$0xff]  }
  0x18   : > { %1705 = vmatpush3.bf16.msra.mxu0 %v433_v5  ;;  %1745 = vmatpush3.bf16.msra.mxu1 %v433_v5  ;;  %v1822_v32 = vld [vmem:[%s1947_s16 + $0x18] sm:$0xff]   ;;  %v1824_v34 = vld [vmem:[%s1947_s16 + $0x20] sm:$0xff]   ;;  %v1826_v36 = vld [vmem:[%s1947_s16 + $0x28] sm:$0xff]  }
  0x19   : > { %1632 = vmatprep.mubr.msk.bf16.mxu0 %vm1843_vm2, %v1841_v0  ;;  %1672 = vmatprep.mubr.msk.bf16.mxu1 %vm1843_vm2, %v1841_v0  ;;  %v1827_v37 = vld [vmem:[%s1941_s13 + $0x30] sm:$0xff]   ;;  %v1829_v39 = vld [vmem:[%s1941_s13 + $0x38] sm:$0xff]   ;;  %v1831_v41 = vld [vmem:[%s1941_s13 + $0x40] sm:$0xff]  }
  0x1a   : > { %1706 = vmatprep.subr.bf16.mxu0 %v1841_v0  ;;  %1746 = vmatprep.subr.bf16.mxu1 %v1841_v0  ;;  %v1828_v38 = vld [vmem:[%s1947_s16 + $0x30] sm:$0xff]   ;;  %v1830_v40 = vld [vmem:[%s1947_s16 + $0x38] sm:$0xff]   ;;  %v1832_v42 = vld [vmem:[%s1947_s16 + $0x40] sm:$0xff]  }
  0x1c   : > { %1707 = vmatpush3.bf16.msra.mxu0 %v1796_v6  ;;  %1747 = vmatpush3.bf16.msra.mxu1 %v1796_v6 }
  0x1f   : > { %1633 = vmatmul.mubr.msk.bf16.gmra.mxu0 %vm400_vm3, %v1799_v9  ;;  %1673 = vmatmul.mubr.msk.bf16.gmra.mxu1 %vm400_vm3, %v1800_v10 }
  0x20   : > { %1636 = vmatprep.mubr.msk.bf16.mxu0 %vm1843_vm2, %v1841_v0  ;;  %1676 = vmatprep.mubr.msk.bf16.mxu1 %vm1843_vm2, %v1841_v0 }
  0x27   : > { %1637 = vmatmul.mubr.msk.bf16.gmra.mxu0 %vm400_vm3, %v1801_v11  ;;  %1677 = vmatmul.mubr.msk.bf16.gmra.mxu1 %vm400_vm3, %v1802_v12 }
  0x28   : > { %1640 = vmatprep.mubr.msk.bf16.mxu0 %vm1843_vm2, %v1841_v0  ;;  %1680 = vmatprep.mubr.msk.bf16.mxu1 %vm1843_vm2, %v1841_v0 }
  0x2f   : > { %1641 = vmatmul.mubr.msk.bf16.gmra.mxu0 %vm400_vm3, %v1803_v13  ;;  %1681 = vmatmul.mubr.msk.bf16.gmra.mxu1 %vm400_vm3, %v1804_v14 }
  0x30   : > { %1644 = vmatprep.mubr.msk.bf16.mxu0 %vm1843_vm2, %v1841_v0  ;;  %1684 = vmatprep.mubr.msk.bf16.mxu1 %vm1843_vm2, %v1841_v0 }
  0x37   : > { %1645 = vmatmul.mubr.msk.bf16.gmra.mxu0 %vm400_vm3, %v1805_v15  ;;  %1685 = vmatmul.mubr.msk.bf16.gmra.mxu1 %vm400_vm3, %v1806_v16 }
  0x38   : > { %1648 = vmatprep.mubr.msk.bf16.mxu0 %vm1843_vm2, %v1841_v0  ;;  %1688 = vmatprep.mubr.msk.bf16.mxu1 %vm1843_vm2, %v1841_v0 }
  0x3f   : > { %1649 = vmatmul.mubr.msk.bf16.gmra.mxu0 %vm400_vm3, %v1807_v17  ;;  %1689 = vmatmul.mubr.msk.bf16.gmra.mxu1 %vm400_vm3, %v1808_v18 }
  0x40   : > { %1652 = vmatprep.mubr.msk.bf16.mxu0 %vm1843_vm2, %v1841_v0  ;;  %1692 = vmatprep.mubr.msk.bf16.mxu1 %vm1843_vm2, %v1841_v0 }
  0x47   : > { %1653 = vmatmul.mubr.msk.bf16.gmra.mxu0 %vm400_vm3, %v1809_v19  ;;  %1693 = vmatmul.mubr.msk.bf16.gmra.mxu1 %vm400_vm3, %v1810_v20 }
  0x48   : > { %1656 = vmatprep.mubr.msk.bf16.mxu0 %vm1843_vm2, %v1841_v0  ;;  %1696 = vmatprep.mubr.msk.bf16.mxu1 %vm1843_vm2, %v1841_v0 }
  0x4f   : > { %1657 = vmatmul.mubr.msk.bf16.gmra.mxu0 %vm400_vm3, %v1811_v21  ;;  %1697 = vmatmul.mubr.msk.bf16.gmra.mxu1 %vm400_vm3, %v1812_v22 }
  0x50   : > { %1660 = vmatprep.mubr.msk.bf16.mxu0 %vm1843_vm2, %v1841_v0  ;;  %1700 = vmatprep.mubr.msk.bf16.mxu1 %vm1843_vm2, %v1841_v0 }
  0x57   : > { %1661 = vmatmul.mubr.msk.bf16.gmra.mxu0 %vm400_vm3, %v1813_v23  ;;  %1701 = vmatmul.mubr.msk.bf16.gmra.mxu1 %vm400_vm3, %v1814_v24 }
  0x58   : > { %1708 = vmatprep.mubr.msk.bf16.mxu0 %vm1843_vm2, %v1841_v0  ;;  %1748 = vmatprep.mubr.msk.bf16.mxu1 %vm1843_vm2, %v1841_v0 }
  0x5f   : > { %1709 = vmatmul.mubr.msk.bf16.vlgmr.msra.gmra.mxu0 %vm400_vm3, %v1815_v25  ;;  %1749 = vmatmul.mubr.msk.bf16.vlgmr.msra.gmra.mxu1 %vm400_vm3, %v1816_v26 }
  0x60   : > { %1712 = vmatprep.mubr.msk.bf16.mxu0 %vm1843_vm2, %v1841_v0  ;;  %1752 = vmatprep.mubr.msk.bf16.mxu1 %vm1843_vm2, %v1841_v0 }
  0x67   : > { %1713 = vmatmul.mubr.msk.bf16.gmra.mxu0 %vm400_vm3, %v1817_v27  ;;  %1753 = vmatmul.mubr.msk.bf16.gmra.mxu1 %vm400_vm3, %v1818_v28 }
  0x68   : > { %1716 = vmatprep.mubr.msk.bf16.mxu0 %vm1843_vm2, %v1841_v0  ;;  %1756 = vmatprep.mubr.msk.bf16.mxu1 %vm1843_vm2, %v1841_v0 }
  0x6f   : > { %1717 = vmatmul.mubr.msk.bf16.gmra.mxu0 %vm400_vm3, %v1819_v29  ;;  %1757 = vmatmul.mubr.msk.bf16.gmra.mxu1 %vm400_vm3, %v1820_v30 }
  0x70   : > { %1720 = vmatprep.mubr.msk.bf16.mxu0 %vm1843_vm2, %v1841_v0  ;;  %1760 = vmatprep.mubr.msk.bf16.mxu1 %vm1843_vm2, %v1841_v0 }
  0x77   : > { %1721 = vmatmul.mubr.msk.bf16.gmra.mxu0 %vm400_vm3, %v1821_v31  ;;  %1761 = vmatmul.mubr.msk.bf16.gmra.mxu1 %vm400_vm3, %v1822_v32 }
  0x78   : > { %1724 = vmatprep.mubr.msk.bf16.mxu0 %vm1843_vm2, %v1841_v0  ;;  %1764 = vmatprep.mubr.msk.bf16.mxu1 %vm1843_vm2, %v1841_v0 }
  0x7f   : > { %1725 = vmatmul.mubr.msk.bf16.gmra.mxu0 %vm400_vm3, %v1823_v33  ;;  %1765 = vmatmul.mubr.msk.bf16.gmra.mxu1 %vm400_vm3, %v1824_v34 }
  0x80   : > { %1728 = vmatprep.mubr.msk.bf16.mxu0 %vm1843_vm2, %v1841_v0  ;;  %1768 = vmatprep.mubr.msk.bf16.mxu1 %vm1843_vm2, %v1841_v0 }
  0x87   : > { %1729 = vmatmul.mubr.msk.bf16.gmra.mxu0 %vm400_vm3, %v1825_v35  ;;  %1769 = vmatmul.mubr.msk.bf16.gmra.mxu1 %vm400_vm3, %v1826_v36 }
  0x88   : > { %1732 = vmatprep.mubr.msk.bf16.mxu0 %vm1843_vm2, %v1841_v0  ;;  %1772 = vmatprep.mubr.msk.bf16.mxu1 %vm1843_vm2, %v1841_v0 }
  0x8f   : > { %1733 = vmatmul.mubr.msk.bf16.gmra.mxu0 %vm400_vm3, %v1827_v37  ;;  %1773 = vmatmul.mubr.msk.bf16.gmra.mxu1 %vm400_vm3, %v1828_v38 }
  0x90   : > { %1736 = vmatprep.mubr.msk.bf16.mxu0 %vm1843_vm2, %v1841_v0  ;;  %1776 = vmatprep.mubr.msk.bf16.mxu1 %vm1843_vm2, %v1841_v0 }
  0x97   : > { %1737 = vmatmul.mubr.msk.bf16.gmra.mxu0 %vm400_vm3, %v1829_v39  ;;  %1777 = vmatmul.mubr.msk.bf16.gmra.mxu1 %vm400_vm3, %v1830_v40 }
  0x98   : > { %1740 = vmatprep.mubr.msk.bf16.mxu0 %vm1843_vm2, %v1841_v0  ;;  %1780 = vmatprep.mubr.msk.bf16.mxu1 %vm1843_vm2, %v1841_v0 }
  0x9f   : > { %1741 = vmatmul.mubr.msk.bf16.gmra.mxu0 %vm400_vm3, %v1831_v41  ;;  %1781 = vmatmul.mubr.msk.bf16.gmra.mxu1 %vm400_vm3, %v1832_v42 }
  0xd7   : > { %v2071_v43 = vpop.f32.mrf.mxu0  ;;  %v2073_v44 = vpop.f32.mrf.mxu1 }
  0xd8   : > { %v735_v45 = vmax.f32 %v2071_v43, %v2073_v44 }
  0xd9   : > { %v1630_v46 = vpop.f32.mrf.mxu0  ;;  %v1670_v47 = vpop.f32.mrf.mxu1 }
  0xdb   : > { %v2077_v48 = vpop.f32.mrf.mxu0  ;;  %v2079_v49 = vpop.f32.mrf.mxu1 }
  0xdc   : > { %v736_v50 = vmax.f32 %v2077_v48, %v2079_v49 }
  0xdd   : > { %v1631_v51 = vpop.f32.mrf.mxu0  ;;  %v1671_v52 = vpop.f32.mrf.mxu1 }
  0xdf   : > { %v2083_v53 = vpop.f32.mrf.mxu0  ;;  %v2085_v54 = vpop.f32.mrf.mxu1 }
  0xe0   : > { %v737_v55 = vmax.f32 %v2083_v53, %v2085_v54 }
  0xe1   : > { %v1634_v56 = vpop.f32.mrf.mxu0  ;;  %v1674_v57 = vpop.f32.mrf.mxu1 }
  0xe3   : > { %v2089_v58 = vpop.f32.mrf.mxu0  ;;  %v2091_v59 = vpop.f32.mrf.mxu1 }
  0xe4   : > { %v738_v60 = vmax.f32 %v2089_v58, %v2091_v59 }
  0xe5   : > { %v1635_v61 = vpop.f32.mrf.mxu0  ;;  %v1675_v62 = vpop.f32.mrf.mxu1 }
  0xe7   : > { %v2095_v63 = vpop.f32.mrf.mxu0  ;;  %v2097_v0 = vpop.f32.mrf.mxu1 }
  0xe8   : > { %v739_v1 = vmax.f32 %v2095_v63, %v2097_v0 }
  0xe9   : > { %v1638_v2 = vpop.f32.mrf.mxu0  ;;  %v1678_v3 = vpop.f32.mrf.mxu1 }
  0xeb   : > { %v2101_v4 = vpop.f32.mrf.mxu0  ;;  %v2103_v5 = vpop.f32.mrf.mxu1 }
  0xec   : > { %v740_v6 = vmax.f32 %v2101_v4, %v2103_v5 }
  0xed   : > { %v1639_v7 = vpop.f32.mrf.mxu0  ;;  %v1679_v8 = vpop.f32.mrf.mxu1 }
  0xef   : > { %v2107_v9 = vpop.f32.mrf.mxu0  ;;  %v2109_v10 = vpop.f32.mrf.mxu1 }
  0xf0   : > { %v741_v11 = vmax.f32 %v2107_v9, %v2109_v10 }
  0xf1   : > { %v1642_v12 = vpop.f32.mrf.mxu0  ;;  %v1682_v13 = vpop.f32.mrf.mxu1 }
  0xf3   : > { %v2113_v14 = vpop.f32.mrf.mxu0  ;;  %v2115_v15 = vpop.f32.mrf.mxu1 }
  0xf4   : > { %v742_v16 = vmax.f32 %v2113_v14, %v2115_v15 }
  0xf5   : > { %v1643_v17 = vpop.f32.mrf.mxu0  ;;  %v1683_v18 = vpop.f32.mrf.mxu1 }
  0xf7   : > { %v2119_v19 = vpop.f32.mrf.mxu0  ;;  %v2121_v20 = vpop.f32.mrf.mxu1 }
  0xf8   : > { %v743_v21 = vmax.f32 %v2119_v19, %v2121_v20 }
  0xf9   : > { %v1646_v22 = vpop.f32.mrf.mxu0  ;;  %v1686_v23 = vpop.f32.mrf.mxu1 }
  0xfb   : > { %v2125_v24 = vpop.f32.mrf.mxu0  ;;  %v2127_v25 = vpop.f32.mrf.mxu1 }
  0xfc   : > { %v744_v26 = vmax.f32 %v2125_v24, %v2127_v25 }
  0xfd   : > { %v1647_v27 = vpop.f32.mrf.mxu0  ;;  %v1687_v28 = vpop.f32.mrf.mxu1 }
  0xff   : > { %v2131_v29 = vpop.f32.mrf.mxu0  ;;  %v2133_v30 = vpop.f32.mrf.mxu1 }
 0x100   : > { %v745_v31 = vmax.f32 %v2131_v29, %v2133_v30 }
 0x101   : > { %v1650_v32 = vpop.f32.mrf.mxu0  ;;  %v1690_v33 = vpop.f32.mrf.mxu1 }
 0x103   : > { %v2137_v34 = vpop.f32.mrf.mxu0  ;;  %v2139_v35 = vpop.f32.mrf.mxu1 }
 0x104   : > { %v746_v36 = vmax.f32 %v2137_v34, %v2139_v35 }
 0x105   : > { %v1651_v37 = vpop.f32.mrf.mxu0  ;;  %v1691_v38 = vpop.f32.mrf.mxu1 }
 0x107   : > { %v2143_v39 = vpop.f32.mrf.mxu0  ;;  %v2145_v40 = vpop.f32.mrf.mxu1 }
 0x108   : > { %v747_v41 = vmax.f32 %v2143_v39, %v2145_v40 }
 0x109   : > { %v1654_v42 = vpop.f32.mrf.mxu0  ;;  %v1694_v46 = vpop.f32.mrf.mxu1 }
 0x10b   : > { %v2149_v47 = vpop.f32.mrf.mxu0  ;;  %v2151_v51 = vpop.f32.mrf.mxu1 }
 0x10d   : > { %v1655_v56 = vpop.f32.mrf.mxu0  ;;  %v1695_v57 = vpop.f32.mrf.mxu1 }
 0x10f   : > { %v2155_v61 = vpop.f32.mrf.mxu0  ;;  %v2157_v62 = vpop.f32.mrf.mxu1 }
 0x111   : > { %v1658_v3 = vpop.f32.mrf.mxu0  ;;  %v1698_v7 = vpop.f32.mrf.mxu1 }
 0x113   : > { %v2161_v8 = vpop.f32.mrf.mxu0  ;;  %v2163_v12 = vpop.f32.mrf.mxu1 }
 0x115   : > { %v1659_v17 = vpop.f32.mrf.mxu0  ;;  %v1699_v18 = vpop.f32.mrf.mxu1 }
 0x117   : > { %v2167_v22 = vpop.f32.mrf.mxu0  ;;  %v2169_v23 = vpop.f32.mrf.mxu1 }
 0x119   : > { %v1662_v28 = vpop.f32.mrf.mxu0  ;;  %v1702_v32 = vpop.f32.mrf.mxu1 }
 0x11a   : > { %v2185_v28 = vld [vmem:[%s2279_s5] ss:$0 sm:$0xff] }
 0x11b   : > { %v2173_v33 = vpop.f32.mrf.mxu0  ;;  %v2175_v37 = vpop.f32.mrf.mxu1 }
 0x11d   : > { %v1663_v42 = vpop.f32.mrf.mxu0  ;;  %v1703_v46 = vpop.f32.mrf.mxu1 }
 0x11f   : > { %v877_v56 = vpop.f32.mrf.mxu0  ;;  %v1090_v57 = vpop.f32.mrf.mxu1 }
 0x120   : > { %v948_v3 = vmax.f32 %v735_v45, %v877_v56 }
 0x121   : > { %v1710_v7 = vpop.f32.mrf.mxu0  ;;  %v1750_v17 = vpop.f32.mrf.mxu1 }
 0x122   : > { %v1161_v18 = vmax.f32 %v948_v3, %v1090_v57 }
 0x123   : > { %v880_v32 = vpop.f32.mrf.mxu0  ;;  %v1093_v27 = vpop.f32.mrf.mxu1 }
 0x124   : > { %v949_v42 = vmax.f32 %v736_v50, %v880_v32  ;;  %v1186_v43 = vadd.f32 %v2185_v28, %v1161_v18 }
 0x125   : > { %v1711_v46 = vpop.f32.mrf.mxu0  ;;  %v1751_v38 = vpop.f32.mrf.mxu1 }
 0x126   : > { %v1162_v44 = vmax.f32 %v949_v42, %v1093_v27  ;;  %v1204_v13 = vmax.f32 %v1186_v43, 0.0 }
 0x127   : > { %v885_v45 = vpop.f32.mrf.mxu0  ;;  %v1098_v56 = vpop.f32.mrf.mxu1 }
 0x128   : > { %v1187_v57 = vadd.f32 %v2185_v28, %v1162_v44  ;;  %v950_v3 = vmax.f32 %v737_v55, %v885_v45 }
 0x129   : > { %v1714_v7 = vpop.f32.mrf.mxu0  ;;  %v1754_v17 = vpop.f32.mrf.mxu1 }
 0x12a   : > { %v1205_v2 = vmax.f32 %v1187_v57, 0.0  ;;  %v1163_v52 = vmax.f32 %v950_v3, %v1098_v56 }
 0x12b   : > { %v888_v48 = vpop.f32.mrf.mxu0  ;;  %v1101_v49 = vpop.f32.mrf.mxu1 }
 0x12c   : > { %v1530_v50 = vpack.c.bf16 %v1205_v2, %v1204_v13  ;;  %v951_v27 = vmax.f32 %v738_v60, %v888_v48  ;;  %v1188_v55 = vadd.f32 %v2185_v28, %v1163_v52 }
 0x12d   : > { %v1715_v53 = vpop.f32.mrf.mxu0  ;;  %v1755_v54 = vpop.f32.mrf.mxu1 }
 0x12e   : > { %1531 = vst [vmem:[%s2199_s22] sm:$0xff] %v1530_v50   ;;  %v1164_v38 = vmax.f32 %v951_v27, %v1101_v49  ;;  %v1206_v43 = vmax.f32 %v1188_v55, 0.0 }
 0x12f   : > { %v893_v18 = vpop.f32.mrf.mxu0  ;;  %v1106_v32 = vpop.f32.mrf.mxu1 }
 0x130   : > { %v1189_v42 = vadd.f32 %v2185_v28, %v1164_v38  ;;  %v952_v46 = vmax.f32 %v739_v1, %v893_v18 }
 0x131   : > { %v1718_v2 = vpop.f32.mrf.mxu0  ;;  %v1758_v13 = vpop.f32.mrf.mxu1 }
 0x132   : > { %v1207_v58 = vmax.f32 %v1189_v42, 0.0  ;;  %v1165_v59 = vmax.f32 %v952_v46, %v1106_v32 }
 0x133   : > { %v896_v60 = vpop.f32.mrf.mxu0  ;;  %v1109_v44 = vpop.f32.mrf.mxu1 }
 0x134   : > { %v1535_v45 = vpack.c.bf16 %v1207_v58, %v1206_v43  ;;  %v953_v52 = vmax.f32 %v740_v6, %v896_v60  ;;  %v1190_v3 = vadd.f32 %v2185_v28, %v1165_v59 }
 0x135   : > { %v1719_v56 = vpop.f32.mrf.mxu0  ;;  %v1759_v57 = vpop.f32.mrf.mxu1 }
 0x136   : > { %1572 = vst [vmem:[%s2199_s22 + $0x8] sm:$0xff] %v1535_v45   ;;  %v1166_v7 = vmax.f32 %v953_v52, %v1109_v44  ;;  %v1208_v50 = vmax.f32 %v1190_v3, 0.0 }
 0x137   : > { %v901_v63 = vpop.f32.mrf.mxu0  ;;  %v1114_v0 = vpop.f32.mrf.mxu1 }
 0x138   : > { %v1191_v1 = vadd.f32 %v2185_v28, %v1166_v7  ;;  %v954_v17 = vmax.f32 %v741_v11, %v901_v63 }
 0x139   : > { %v1722_v48 = vpop.f32.mrf.mxu0  ;;  %v1762_v49 = vpop.f32.mrf.mxu1 }
 0x13a   : > { %v1209_v4 = vmax.f32 %v1191_v1, 0.0  ;;  %v1167_v5 = vmax.f32 %v954_v17, %v1114_v0 }
 0x13b   : > { %v904_v6 = vpop.f32.mrf.mxu0  ;;  %v1117_v27 = vpop.f32.mrf.mxu1 }
 0x13c   : > { %v1540_v53 = vpack.c.bf16 %v1209_v4, %v1208_v50  ;;  %v955_v54 = vmax.f32 %v742_v16, %v904_v6  ;;  %v1192_v18 = vadd.f32 %v2185_v28, %v1167_v5 }
 0x13d   : > { %v1723_v55 = vpop.f32.mrf.mxu0  ;;  %v1763_v38 = vpop.f32.mrf.mxu1 }
 0x13e   : > { %1573 = vst [vmem:[%s2199_s22 + $0x10] sm:$0xff] %v1540_v53   ;;  %v1168_v32 = vmax.f32 %v955_v54, %v1117_v27  ;;  %v1210_v13 = vmax.f32 %v1192_v18, 0.0  ;;  %v2281_v55 = vmax.f32 %v2149_v47, %v2151_v51 }
 0x13f   : > { %v909_v9 = vpop.f32.mrf.mxu0  ;;  %v1122_v10 = vpop.f32.mrf.mxu1 }
 0x140   : > { %v1193_v11 = vadd.f32 %v2185_v28, %v1168_v32  ;;  %v956_v42 = vmax.f32 %v743_v21, %v909_v9 }
 0x141   : > { %v1726_v46 = vpop.f32.mrf.mxu0  ;;  %v1766_v2 = vpop.f32.mrf.mxu1 }
 0x142   : > { %v1211_v14 = vmax.f32 %v1193_v11, 0.0  ;;  %v1169_v15 = vmax.f32 %v956_v42, %v1122_v10  ;;  %v2282_v11 = vmax.f32 %v2155_v61, %v2157_v62 }
 0x143   : > { %v912_v16 = vpop.f32.mrf.mxu0  ;;  %v1125_v43 = vpop.f32.mrf.mxu1 }
 0x144   : > { %v1545_v58 = vpack.c.bf16 %v1211_v14, %v1210_v13  ;;  %v957_v59 = vmax.f32 %v744_v26, %v912_v16  ;;  %v1194_v45 = vadd.f32 %v2185_v28, %v1169_v15 }
 0x145   : > { %v1727_v60 = vpop.f32.mrf.mxu0  ;;  %v1767_v44 = vpop.f32.mrf.mxu1 }
 0x146   : > { %1574 = vst [vmem:[%s2199_s22 + $0x18] sm:$0xff] %v1545_v58   ;;  %v1170_v52 = vmax.f32 %v957_v59, %v1125_v43  ;;  %v1212_v7 = vmax.f32 %v1194_v45, 0.0  ;;  %v2283_v43 = vmax.f32 %v2161_v8, %v2163_v12 }
 0x147   : > { %v917_v19 = vpop.f32.mrf.mxu0  ;;  %v1130_v20 = vpop.f32.mrf.mxu1 }
 0x148   : > { %v1195_v21 = vadd.f32 %v2185_v28, %v1170_v52  ;;  %v958_v56 = vmax.f32 %v745_v31, %v917_v19  ;;  %v2284_v19 = vmax.f32 %v2167_v22, %v2169_v23 }
 0x149   : > { %v1730_v57 = vpop.f32.mrf.mxu0  ;;  %v1770_v3 = vpop.f32.mrf.mxu1 }
 0x14a   : > { %v1213_v24 = vmax.f32 %v1195_v21, 0.0  ;;  %v1171_v25 = vmax.f32 %v958_v56, %v1130_v20 }
 0x14b   : > { %v920_v26 = vpop.f32.mrf.mxu0  ;;  %v1133_v63 = vpop.f32.mrf.mxu1 }
 0x14c   : > { %v1550_v0 = vpack.c.bf16 %v1213_v24, %v1212_v7  ;;  %v959_v1 = vmax.f32 %v746_v36, %v920_v26  ;;  %v1196_v49 = vadd.f32 %v2185_v28, %v1171_v25  ;;  %v2285_v26 = vmax.f32 %v2173_v33, %v2175_v37 }
 0x14d   : > { %v1731_v17 = vpop.f32.mrf.mxu0  ;;  %v1771_v48 = vpop.f32.mrf.mxu1 }
 0x14e   : > { %1575 = vst [vmem:[%s2199_s22 + $0x20] sm:$0xff] %v1550_v0   ;;  %v1172_v50 = vmax.f32 %v959_v1, %v1133_v63  ;;  %v1214_v27 = vmax.f32 %v1196_v49, 0.0 }
 0x14f   : > { %v925_v29 = vpop.f32.mrf.mxu0  ;;  %v1138_v30 = vpop.f32.mrf.mxu1 }
 0x150   : > { %v1197_v31 = vadd.f32 %v2185_v28, %v1172_v50  ;;  %v960_v4 = vmax.f32 %v747_v41, %v925_v29 }
 0x151   : > { %v1734_v5 = vpop.f32.mrf.mxu0  ;;  %v1774_v6 = vpop.f32.mrf.mxu1 }
 0x152   : > { %v1215_v34 = vmax.f32 %v1197_v31, 0.0  ;;  %v1173_v35 = vmax.f32 %v960_v4, %v1138_v30 }
 0x153   : > { %v928_v36 = vpop.f32.mrf.mxu0  ;;  %v1141_v53 = vpop.f32.mrf.mxu1 }
 0x154   : > { %v1555_v54 = vpack.c.bf16 %v1215_v34, %v1214_v27  ;;  %v961_v38 = vmax.f32 %v2281_v55, %v928_v36  ;;  %v1198_v9 = vadd.f32 %v2185_v28, %v1173_v35 }
 0x155   : > { %v1735_v18 = vpop.f32.mrf.mxu0  ;;  %v1775_v32 = vpop.f32.mrf.mxu1 }
 0x156   : > { %1576 = vst [vmem:[%s2199_s22 + $0x28] sm:$0xff] %v1555_v54   ;;  %v1174_v10 = vmax.f32 %v961_v38, %v1141_v53  ;;  %v1216_v13 = vmax.f32 %v1198_v9, 0.0 }
 0x157   : > { %v933_v39 = vpop.f32.mrf.mxu0  ;;  %v1146_v40 = vpop.f32.mrf.mxu1 }
 0x158   : > { %v1199_v41 = vadd.f32 %v2185_v28, %v1174_v10  ;;  %v962_v42 = vmax.f32 %v2282_v11, %v933_v39 }
 0x159   : > { %v1738_v46 = vpop.f32.mrf.mxu0  ;;  %v1778_v2 = vpop.f32.mrf.mxu1 }
 0x15a   : > { %v1217_v47 = vmax.f32 %v1199_v41, 0.0  ;;  %v1175_v51 = vmax.f32 %v962_v42, %v1146_v40 }
 0x15b   : > { %v936_v14 = vpop.f32.mrf.mxu0  ;;  %v1149_v15 = vpop.f32.mrf.mxu1 }
 0x15c   : > { %v1560_v16 = vpack.c.bf16 %v1217_v47, %v1216_v13  ;;  %v963_v58 = vmax.f32 %v2283_v43, %v936_v14  ;;  %v1200_v44 = vadd.f32 %v2185_v28, %v1175_v51 }
 0x15d   : > { %v1739_v59 = vpop.f32.mrf.mxu0  ;;  %v1779_v60 = vpop.f32.mrf.mxu1 }
 0x15e   : > { %1577 = vst [vmem:[%s2199_s22 + $0x30] sm:$0xff] %v1560_v16   ;;  %v1176_v45 = vmax.f32 %v963_v58, %v1149_v15  ;;  %v1218_v57 = vmax.f32 %v1200_v44, 0.0 }
 0x15f   : > { %v941_v61 = vpop.f32.mrf.mxu0  ;;  %v1154_v62 = vpop.f32.mrf.mxu1 }
 0x160   : > { %v1201_v52 = vadd.f32 %v2185_v28, %v1176_v45  ;;  %v964_v20 = vmax.f32 %v2284_v19, %v941_v61 }
 0x161   : > { %v1742_v21 = vpop.f32.mrf.mxu0  ;;  %v1782_v56 = vpop.f32.mrf.mxu1 }
 0x162   : > { %v1219_v8 = vmax.f32 %v1201_v52, 0.0  ;;  %v1177_v12 = vmax.f32 %v964_v20, %v1154_v62 }
 0x163   : > { %v944_v3 = vpop.f32.mrf.mxu0  ;;  %v1157_v7 = vpop.f32.mrf.mxu1 }
 0x164   : > { %v1565_v24 = vpack.c.bf16 %v1219_v8, %v1218_v57  ;;  %v1202_v25 = vadd.f32 %v2185_v28, %v1177_v12  ;;  %v965_v63 = vmax.f32 %v2285_v26, %v944_v3 }
 0x165   : > { %v1743_v0 = vpop.f32.mrf.mxu0  ;;  %v1783_v1 = vpop.f32.mrf.mxu1 }
 0x166   : > { %1578 = vst [vmem:[%s2199_s22 + $0x38] sm:$0xff] %v1565_v24   ;;  %v1178_v22 = vmax.f32 %v965_v63, %v1157_v7  ;;  %v1220_v17 = vmax.f32 %v1202_v25, 0.0 }
 0x168   : > { %v1203_v23 = vadd.f32 %v2185_v28, %v1178_v22 }
 0x16a   : > { %v1221_v48 = vmax.f32 %v1203_v23, 0.0 }
 0x16c   : > { %v1570_v49 = vpack.c.bf16 %v1221_v48, %v1220_v17 }
 0x16e   : > { %1579 = vst [vmem:[%s2199_s22 + $0x40] sm:$0xff] %v1570_v49  }
 0x16f PF: > { %s16_s21 = sadd.s32 1, %s1839_s21  }
 0x170   : > { %p13_p4 = scmp.ge.s32.totalorder %s16_s21, 4  }
 0x172   :  { %15 = sbr.rel (!%p13_p4) target bundleno = 1 (0x1), region = 83 }

// kernel: digitsum_image_phi_forward.4
= control target key start
LH: loop header
LB: loop body
LE: loop exit
PB: predicated region body
PF: predicated region fallthrough
CT: control target
= control target key end

     0   :  { %s1039_s21 = smov 0   ;;  %s1176_s0 = inlined_call_operand.vmem [shape: bf16[32,250], index: 0, kind: input, shape index: {}]   ;;  %s1177_s1 = inlined_call_operand.vmem [shape: bf16[32,250], index: 1, kind: input, shape index: {}]   ;;  %s1178_s2 = inlined_call_operand.vmem [shape: bf16[32,250], index: 2, kind: input, shape index: {}]   ;;  %s1179_s3 = inlined_call_operand.vmem [shape: bf16[32,250], index: 3, kind: input, shape index: {}]   ;;  %s1180_s4 = inlined_call_operand.vmem [shape: bf16[250,128], index: 4, kind: input, shape index: {}]   ;;  %s1181_s5 = inlined_call_operand.vmem [shape: f32[1,128], index: 5, kind: input, shape index: {}]   ;;  %s1182_s6 = inlined_call_operand.vmem [shape: bf16[32,128], index: 6, kind: output, shape index: {}]  }
   0x1 LB: > { %s805_s22 = sadd.s32 4294967295, %s1002_s21   ;;  %p809_p0 = scmp.ge.s32.totalorder %s1002_s21, 1  ;;  %s1002_s21 = sphi %s1039_s21, %s16_s21  }
   0x2   : > { %p250_p1 = scmp.lt.s32.totalorder %s1002_s21, 3 }
   0x4   : > { %p251_p2 = pnand %p809_p0, %p250_p1 }
   0x5   : > { %s810_s29 = sshll.u32 (!%p251_p2), %s805_s22, 1 }
   0x6   : > { %254 = sbr.rel (%p251_p2) target bundleno = 288 (0x120), region = 44  ;;  %p300_p3 = scmp.lt.s32.totalorder (!%p251_p2), %s810_s29, 3 }
   0xb   : > { %v1050_v0 = vld [vmem:[%s1180_s4 + $0x78] sm:$0x1f]   ;;  %vm476_vm0 = vcmask 1044480   ;;  %v1064_v2 = vld [vmem:[%s1180_s4 + $0x70] sm:$0xff]   ;;  %v1078_v4 = vld [vmem:[%s1180_s4 + $0x68] sm:$0xff]   ;;  %s1184_s29 = smov (!%p300_p3, %s810_s29), 3 }
   0xc   : > { %v1055_v1 = vld [vmem:[%s1180_s4 + $0x38] sm:$0xff]   ;;  %956 = vmatprep.subr.msk.bf16.mxu0 %vm476_vm0, %v1050_v0  ;;  %957 = vmatprep.subr.msk.bf16.mxu1 %vm476_vm0, %v1050_v0  ;;  %v1071_v3 = vld [vmem:[%s1180_s4 + $0x30] sm:$0xff]   ;;  %v1085_v5 = vld [vmem:[%s1180_s4 + $0x28] sm:$0xff]   ;;  %s857_s16 = sshll.u32 %s1184_s29, 3  ;;  %vm472_vm1 = vcmask 998400   ;;  %s823_s26 = sshll.u32 %s1184_s29, 2 }
   0xd   : > { %869 = vmatpush3.bf16.msra.mxu0 %v1055_v1  ;;  %891 = vmatpush3.bf16.msra.mxu1 %v1055_v1  ;;  %v974_v6 = vld [vmem:[%s1180_s4 + $0x60] sm:$0xff]   ;;  %v976_v8 = vld [vmem:[%s1180_s4 + $0x58] sm:$0xff]   ;;  %s1106_s22 = scalar_lea.vmem %s1176_s0, %s857_s16  ;;  %s311_s27 = scalar_lea.vmem %s1177_s1, %s857_s16  ;;  %v978_v10 = vld [vmem:[%s1180_s4 + $0x50] sm:$0xff]  }
   0xe   : > { %870 = vmatprep.subr.bf16.mxu0 %v1064_v2  ;;  %892 = vmatprep.subr.bf16.mxu1 %v1064_v2  ;;  %v975_v7 = vld [vmem:[%s1180_s4 + $0x20] sm:$0xff]   ;;  %v977_v9 = vld [vmem:[%s1180_s4 + $0x18] sm:$0xff]   ;;  %s1121_s9 = scalar_lea.vmem %s1178_s2, %s857_s16  ;;  %s1126_s12 = scalar_lea.vmem %s1179_s3, %s857_s16  ;;  %v979_v13 = vld [vmem:[%s1180_s4 + $0x10] sm:$0xff]  }
   0xf   : > { %v986_v11 = vld [vmem:[%s1106_s22 + $0x4] ss:$8 sps:$4 sm:$0xff]   ;;  %v984_v18 = vld [vmem:[%s1106_s22] ss:$8 sps:$4 sm:$0xff]   ;;  %s331_s30 = scalar_lea.vmem %s1182_s6, %s823_s26 }
  0x10   : > { %v989_v12 = vld [vmem:[%s311_s27 + $0x4] ss:$8 sps:$4 sm:$0xff]   ;;  %842 = vmatprep.mubr.msk.bf16.mxu0 %vm472_vm1, %v986_v11  ;;  %v987_v19 = vld [vmem:[%s311_s27] ss:$8 sps:$4 sm:$0xff]  }
  0x11   : > { %871 = vmatpush3.bf16.msra.mxu0 %v1071_v3  ;;  %893 = vmatpush3.bf16.msra.mxu1 %v1071_v3  ;;  %v980_v14 = vld [vmem:[%s1180_s4 + $0x48] sm:$0xff]   ;;  %v982_v16 = vld [vmem:[%s1180_s4 + $0x40] sm:$0xff]  }
  0x12   : > { %872 = vmatprep.subr.bf16.mxu0 %v1078_v4  ;;  %894 = vmatprep.subr.bf16.mxu1 %v1078_v4  ;;  %v981_v15 = vld [vmem:[%s1180_s4 + $0x8] sm:$0xff]   ;;  %v983_v17 = vld [vmem:[%s1180_s4] sm:$0xff]  }
  0x13   : > { %845 = vmatprep.mubr.msk.bf16.mxu1 %vm472_vm1, %v989_v12  ;;  %v990_v20 = vld [vmem:[%s1121_s9 + $0x4] ss:$8 sps:$4 sm:$0xff]   ;;  %v994_v22 = vld [vmem:[%s1121_s9] ss:$8 sps:$4 sm:$0xff]  }
  0x14   : > { %v992_v21 = vld [vmem:[%s1126_s12 + $0x4] ss:$8 sps:$4 sm:$0xff]   ;;  %v995_v23 = vld [vmem:[%s1126_s12] ss:$8 sps:$4 sm:$0xff]  }
  0x15   : > { %873 = vmatpush3.bf16.msra.mxu0 %v1085_v5  ;;  %895 = vmatpush3.bf16.msra.mxu1 %v1085_v5  ;;  %v852_v51 = vld [vmem:[%s1181_s5] ss:$0 sm:$0xff] }
  0x16   : > { %874 = vmatprep.subr.bf16.mxu0 %v974_v6  ;;  %896 = vmatprep.subr.bf16.mxu1 %v974_v6 }
  0x19   : > { %875 = vmatpush3.bf16.msra.mxu0 %v975_v7  ;;  %897 = vmatpush3.bf16.msra.mxu1 %v975_v7 }
  0x1a   : > { %876 = vmatprep.subr.bf16.mxu0 %v976_v8  ;;  %898 = vmatprep.subr.bf16.mxu1 %v976_v8 }
  0x1d   : > { %877 = vmatpush3.bf16.msra.mxu0 %v977_v9  ;;  %899 = vmatpush3.bf16.msra.mxu1 %v977_v9 }
  0x1e   : > { %878 = vmatprep.subr.bf16.mxu0 %v978_v10  ;;  %900 = vmatprep.subr.bf16.mxu1 %v978_v10 }
  0x21   : > { %879 = vmatpush3.bf16.msra.mxu0 %v979_v13  ;;  %901 = vmatpush3.bf16.msra.mxu1 %v979_v13 }
  0x22   : > { %880 = vmatprep.subr.bf16.mxu0 %v980_v14  ;;  %902 = vmatprep.subr.bf16.mxu1 %v980_v14 }
  0x25   : > { %881 = vmatpush3.bf16.msra.mxu0 %v981_v15  ;;  %903 = vmatpush3.bf16.msra.mxu1 %v981_v15 }
  0x26   : > { %882 = vmatprep.subr.bf16.mxu0 %v982_v16  ;;  %904 = vmatprep.subr.bf16.mxu1 %v982_v16 }
  0x29   : > { %883 = vmatpush3.bf16.msra.mxu0 %v983_v17  ;;  %905 = vmatpush3.bf16.msra.mxu1 %v983_v17 }
  0x2a   : > { %958 = vmatprep.subr.msk.bf16.mxu0 %vm476_vm0, %v1050_v0  ;;  %959 = vmatprep.subr.msk.bf16.mxu1 %vm476_vm0, %v1050_v0 }
  0x2c   : > { %513 = vmatmul.mubr.bf16.vlgmr.msra.gmra.mxu0 %v984_v18  ;;  %568 = vmatmul.mubr.bf16.vlgmr.msra.gmra.mxu1 %v987_v19 }
  0x2d   : > { %913 = vmatpush3.bf16.msra.mxu0 %v1055_v1  ;;  %935 = vmatpush3.bf16.msra.mxu1 %v1055_v1 }
  0x2e   : > { %914 = vmatprep.subr.bf16.mxu0 %v1064_v2  ;;  %936 = vmatprep.subr.bf16.mxu1 %v1064_v2 }
  0x2f   : > { %848 = vmatprep.mubr.msk.bf16.mxu0 %vm472_vm1, %v990_v20  ;;  %851 = vmatprep.mubr.msk.bf16.mxu1 %vm472_vm1, %v992_v21 }
  0x31   : > { %915 = vmatpush3.bf16.msra.mxu0 %v1071_v3  ;;  %937 = vmatpush3.bf16.msra.mxu1 %v1071_v3 }
  0x32   : > { %916 = vmatprep.subr.bf16.mxu0 %v1078_v4  ;;  %938 = vmatprep.subr.bf16.mxu1 %v1078_v4 }
  0x35   : > { %917 = vmatpush3.bf16.msra.mxu0 %v1085_v5  ;;  %939 = vmatpush3.bf16.msra.mxu1 %v1085_v5 }
  0x36   : > { %918 = vmatprep.subr.bf16.mxu0 %v974_v6  ;;  %940 = vmatprep.subr.bf16.mxu1 %v974_v6 }
  0x39   : > { %919 = vmatpush3.bf16.msra.mxu0 %v975_v7  ;;  %941 = vmatpush3.bf16.msra.mxu1 %v975_v7 }
  0x3a   : > { %920 = vmatprep.subr.bf16.mxu0 %v976_v8  ;;  %942 = vmatprep.subr.bf16.mxu1 %v976_v8 }
  0x3d   : > { %921 = vmatpush3.bf16.msra.mxu0 %v977_v9  ;;  %943 = vmatpush3.bf16.msra.mxu1 %v977_v9 }
  0x3e   : > { %922 = vmatprep.subr.bf16.mxu0 %v978_v10  ;;  %944 = vmatprep.subr.bf16.mxu1 %v978_v10 }
  0x41   : > { %923 = vmatpush3.bf16.msra.mxu0 %v979_v13  ;;  %945 = vmatpush3.bf16.msra.mxu1 %v979_v13 }
  0x42   : > { %924 = vmatprep.subr.bf16.mxu0 %v980_v14  ;;  %946 = vmatprep.subr.bf16.mxu1 %v980_v14 }
  0x45   : > { %925 = vmatpush3.bf16.msra.mxu0 %v981_v15  ;;  %947 = vmatpush3.bf16.msra.mxu1 %v981_v15 }
  0x46   : > { %926 = vmatprep.subr.bf16.mxu0 %v982_v16  ;;  %948 = vmatprep.subr.bf16.mxu1 %v982_v16 }
  0x49   : > { %927 = vmatpush3.bf16.msra.mxu0 %v983_v17  ;;  %949 = vmatpush3.bf16.msra.mxu1 %v983_v17 }
  0x4c   : > { %625 = vmatmul.mubr.bf16.vlgmr.msra.gmra.mxu0 %v994_v22  ;;  %682 = vmatmul.mubr.bf16.vlgmr.msra.gmra.mxu1 %v995_v23 }
  0xec   : > { %v884_v24 = vpop.f32.mrf.mxu0  ;;  %v906_v25 = vpop.f32.mrf.mxu1 }
  0xee   : > { %v885_v26 = vpop.f32.mrf.mxu0  ;;  %v907_v27 = vpop.f32.mrf.mxu1 }
  0xef   : > { %v886_v32 = vadd.f32 %v885_v26, %v884_v24  ;;  %v908_v33 = vadd.f32 %v907_v27, %v906_v25 }
  0xf0   : > { %v887_v28 = vpop.f32.mrf.mxu0  ;;  %v909_v29 = vpop.f32.mrf.mxu1 }
  0xf1   : > { %v576_v38 = vmax.f32 %v886_v32, %v908_v33 }
  0xf2   : > { %v888_v30 = vpop.f32.mrf.mxu0  ;;  %v910_v31 = vpop.f32.mrf.mxu1 }
  0xf3   : > { %v889_v39 = vadd.f32 %v888_v30, %v887_v28  ;;  %v911_v40 = vadd.f32 %v910_v31, %v909_v29 }
  0xf5   : > { %v577_v48 = vmax.f32 %v889_v39, %v911_v40 }
 0x10c   : > { %v928_v34 = vpop.f32.mrf.mxu0  ;;  %v950_v35 = vpop.f32.mrf.mxu1 }
 0x10e   : > { %v929_v36 = vpop.f32.mrf.mxu0  ;;  %v951_v37 = vpop.f32.mrf.mxu1 }
 0x10f   : > { %v930_v41 = vadd.f32 %v929_v36, %v928_v34  ;;  %v952_v45 = vadd.f32 %v951_v37, %v950_v35 }
 0x110   : > { %v931_v42 = vpop.f32.mrf.mxu0  ;;  %v953_v43 = vpop.f32.mrf.mxu1 }
 0x111   : > { %v633_v44 = vmax.f32 %v576_v38, %v930_v41 }
 0x112   : > { %v932_v46 = vpop.f32.mrf.mxu0  ;;  %v954_v47 = vpop.f32.mrf.mxu1 }
 0x113   : > { %v690_v49 = vmax.f32 %v633_v44, %v952_v45  ;;  %v933_v50 = vadd.f32 %v932_v46, %v931_v42  ;;  %v955_v53 = vadd.f32 %v954_v47, %v953_v43 }
 0x115   : > { %v634_v52 = vmax.f32 %v577_v48, %v933_v50  ;;  %v699_v54 = vadd.f32 %v852_v51, %v690_v49 }
 0x117   : > { %v691_v55 = vmax.f32 %v634_v52, %v955_v53  ;;  %v701_v57 = vmax.f32 %v699_v54, 0.0 }
 0x119   : > { %v700_v56 = vadd.f32 %v852_v51, %v691_v55 }
 0x11b   : > { %v702_v58 = vmax.f32 %v700_v56, 0.0 }
 0x11d   : > { %v866_v59 = vpack.c.bf16 %v702_v58, %v701_v57 }
 0x11f   : > { %867 = vst [vmem:[%s331_s30] sm:$0xff] %v866_v59  }
 0x120 PF: > { %s16_s21 = sadd.s32 1, %s1002_s21  }
 0x121   : > { %p13_p4 = scmp.ge.s32.totalorder %s16_s21, 4  }
 0x123   :  { %15 = sbr.rel (!%p13_p4) target bundleno = 1 (0x1), region = 83 }

// kernel: digitsum_image_phi_forward.5
= control target key start
LH: loop header
LB: loop body
LE: loop exit
PB: predicated region body
PF: predicated region fallthrough
CT: control target
= control target key end

     0   :  { %vm2069_vm0 = vmmov 0   ;;  %s2541_s1 = inlined_call_operand.vmem [shape: bf16[2048,128], index: 1, kind: input, shape index: {}]   ;;  %s2542_s0 = inlined_call_operand.vmem [shape: bf16[8,2048], index: 0, kind: input, shape index: {}]   ;;  %s2543_s3 = inlined_call_operand.vmem [shape: bf16[128,128], index: 3, kind: input, shape index: {}]   ;;  %s2544_s2 = inlined_call_operand.vmem [shape: f32[1,128], index: 2, kind: input, shape index: {}]   ;;  %s2545_s4 = inlined_call_operand.vmem [shape: f32[1,128], index: 4, kind: input, shape index: {}]   ;;  %s2546_s5 = inlined_call_operand.vmem [shape: f32[8,128], index: 5, kind: output, shape index: {}]  }
   0x1   :  { %v1916_v0 = vld [vmem:[%s2541_s1 + $0x78] sm:$0xff]   ;;  %v1920_v4 = vld [vmem:[%s2541_s1 + $0x70] sm:$0xff]   ;;  %v1924_v8 = vld [vmem:[%s2541_s1 + $0x68] sm:$0xff]  }
   0x2   :  { %v1917_v1 = vld [vmem:[%s2541_s1 + $0xf8] sm:$0xff]   ;;  %1709 = vmatprep.subr.bf16.mxu0 %v1916_v0  ;;  %v1921_v5 = vld [vmem:[%s2541_s1 + $0xf0] sm:$0xff]   ;;  %v1925_v9 = vld [vmem:[%s2541_s1 + $0xe8] sm:$0xff]  }
   0x3   :  { %v1918_v2 = vld [vmem:[%s2541_s1 + $0x38] sm:$0xff]   ;;  %1731 = vmatprep.subr.bf16.mxu1 %v1917_v1  ;;  %v1922_v6 = vld [vmem:[%s2541_s1 + $0x30] sm:$0xff]   ;;  %v1926_v10 = vld [vmem:[%s2541_s1 + $0x28] sm:$0xff]  }
   0x4   :  { %v1919_v3 = vld [vmem:[%s2541_s1 + $0xb8] sm:$0xff]   ;;  %1710 = vmatpush3.bf16.msra.mxu0 %v1918_v2  ;;  %v1923_v7 = vld [vmem:[%s2541_s1 + $0xb0] sm:$0xff]   ;;  %v1927_v11 = vld [vmem:[%s2541_s1 + $0xa8] sm:$0xff]  }
   0x5   :  { %1732 = vmatpush3.bf16.msra.mxu1 %v1919_v3  ;;  %1711 = vmatprep.subr.bf16.mxu0 %v1920_v4  ;;  %v1928_v12 = vld [vmem:[%s2541_s1 + $0x60] sm:$0xff]   ;;  %v1932_v16 = vld [vmem:[%s2541_s1 + $0x58] sm:$0xff]   ;;  %v1936_v20 = vld [vmem:[%s2541_s1 + $0x50] sm:$0xff]  }
   0x6   :  { %1733 = vmatprep.subr.bf16.mxu1 %v1921_v5  ;;  %v1929_v13 = vld [vmem:[%s2541_s1 + $0xe0] sm:$0xff]   ;;  %v1933_v17 = vld [vmem:[%s2541_s1 + $0xd8] sm:$0xff]   ;;  %v1937_v21 = vld [vmem:[%s2541_s1 + $0xd0] sm:$0xff]  }
   0x7   :  { %v1930_v14 = vld [vmem:[%s2541_s1 + $0x20] sm:$0xff]   ;;  %v1934_v18 = vld [vmem:[%s2541_s1 + $0x18] sm:$0xff]   ;;  %v1938_v22 = vld [vmem:[%s2541_s1 + $0x10] sm:$0xff]  }
   0x8   :  { %1712 = vmatpush3.bf16.msra.mxu0 %v1922_v6  ;;  %v1931_v15 = vld [vmem:[%s2541_s1 + $0xa0] sm:$0xff]   ;;  %v1935_v19 = vld [vmem:[%s2541_s1 + $0x98] sm:$0xff]   ;;  %v1939_v23 = vld [vmem:[%s2541_s1 + $0x90] sm:$0xff]  }
   0x9   :  { %1734 = vmatpush3.bf16.msra.mxu1 %v1923_v7  ;;  %1713 = vmatprep.subr.bf16.mxu0 %v1924_v8  ;;  %v1940_v24 = vld [vmem:[%s2541_s1 + $0x48] sm:$0xff]   ;;  %v1944_v28 = vld [vmem:[%s2541_s1 + $0x40] sm:$0xff]   ;;  %v1952_v38 = vld [vmem:[%s2541_s1 + $0x178] sm:$0xff]  }
   0xa   :  { %1735 = vmatprep.subr.bf16.mxu1 %v1925_v9  ;;  %v1941_v25 = vld [vmem:[%s2541_s1 + $0xc8] sm:$0xff]   ;;  %v1945_v29 = vld [vmem:[%s2541_s1 + $0xc0] sm:$0xff]   ;;  %v1953_v39 = vld [vmem:[%s2541_s1 + $0x1f8] sm:$0xff]  }
   0xb   :  { %v1942_v26 = vld [vmem:[%s2541_s1 + $0x8] sm:$0xff]   ;;  %v1946_v30 = vld [vmem:[%s2541_s1] sm:$0xff]   ;;  %v1954_v40 = vld [vmem:[%s2541_s1 + $0x138] sm:$0xff]  }
   0xc   :  { %1714 = vmatpush3.bf16.msra.mxu0 %v1926_v10  ;;  %v1943_v27 = vld [vmem:[%s2541_s1 + $0x88] sm:$0xff]   ;;  %v1947_v31 = vld [vmem:[%s2541_s1 + $0x80] sm:$0xff]   ;;  %v1955_v41 = vld [vmem:[%s2541_s1 + $0x1b8] sm:$0xff]  }
   0xd   :  { %1736 = vmatpush3.bf16.msra.mxu1 %v1927_v11  ;;  %1715 = vmatprep.subr.bf16.mxu0 %v1928_v12  ;;  %v21_v32 = vld [vmem:[%s2542_s0] sm:$0xff]  ;;  %v22_v33 = vld [vmem:[%s2542_s0 + $0x8] sm:$0xff]  ;;  %v1956_v42 = vld [vmem:[%s2541_s1 + $0x170] sm:$0xff]  }
   0xe   :  { %1737 = vmatprep.subr.bf16.mxu1 %v1929_v13  ;;  %v1556_v34 = vcombine.low %v21_v32, %v21_v32  ;;  %v1557_v35 = vcombine.high %v21_v32, %v21_v32  ;;  %v1558_v36 = vcombine.low %v22_v33, %v22_v33  ;;  %v1559_v37 = vcombine.high %v22_v33, %v22_v33  ;;  %v1957_v43 = vld [vmem:[%s2541_s1 + $0x1f0] sm:$0xff]   ;;  %v1960_v46 = vld [vmem:[%s2541_s1 + $0x168] sm:$0xff]   ;;  %v1964_v50 = vld [vmem:[%s2541_s1 + $0x160] sm:$0xff]  }
   0xf   :  { %v1958_v44 = vld [vmem:[%s2541_s1 + $0x130] sm:$0xff]   ;;  %v1961_v47 = vld [vmem:[%s2541_s1 + $0x1e8] sm:$0xff]   ;;  %v1965_v51 = vld [vmem:[%s2541_s1 + $0x1e0] sm:$0xff]  }
  0x10   :  { %1716 = vmatpush3.bf16.msra.mxu0 %v1930_v14  ;;  %1148 = vmatprep.mubr.bf16.mxu0 %v1557_v35  ;;  %v1959_v45 = vld [vmem:[%s2541_s1 + $0x1b0] sm:$0xff]   ;;  %v1962_v48 = vld [vmem:[%s2541_s1 + $0x128] sm:$0xff]   ;;  %v1966_v52 = vld [vmem:[%s2541_s1 + $0x120] sm:$0xff]  }
  0x11   :  { %1738 = vmatpush3.bf16.msra.mxu1 %v1931_v15  ;;  %1717 = vmatprep.subr.bf16.mxu0 %v1932_v16  ;;  %v1963_v49 = vld [vmem:[%s2541_s1 + $0x1a8] sm:$0xff]   ;;  %v1967_v53 = vld [vmem:[%s2541_s1 + $0x1a0] sm:$0xff]   ;;  %v1968_v54 = vld [vmem:[%s2541_s1 + $0x158] sm:$0xff]  }
  0x12   :  { %1739 = vmatprep.subr.bf16.mxu1 %v1933_v17  ;;  %1188 = vmatprep.mubr.bf16.mxu1 %v1559_v37  ;;  %v1969_v55 = vld [vmem:[%s2541_s1 + $0x1d8] sm:$0xff]   ;;  %v1972_v58 = vld [vmem:[%s2541_s1 + $0x150] sm:$0xff]   ;;  %v1976_v62 = vld [vmem:[%s2541_s1 + $0x148] sm:$0xff]  }
  0x13   :  { %v1970_v56 = vld [vmem:[%s2541_s1 + $0x118] sm:$0xff]   ;;  %v1973_v59 = vld [vmem:[%s2541_s1 + $0x1d0] sm:$0xff]   ;;  %v1977_v63 = vld [vmem:[%s2541_s1 + $0x1c8] sm:$0xff]  }
  0x14   :  { %1718 = vmatpush3.bf16.msra.mxu0 %v1934_v18  ;;  %v1971_v57 = vld [vmem:[%s2541_s1 + $0x198] sm:$0xff]   ;;  %v1974_v60 = vld [vmem:[%s2541_s1 + $0x110] sm:$0xff]   ;;  %v1978_v0 = vld [vmem:[%s2541_s1 + $0x108] sm:$0xff]  }
  0x15   :  { %1740 = vmatpush3.bf16.msra.mxu1 %v1935_v19  ;;  %1719 = vmatprep.subr.bf16.mxu0 %v1936_v20  ;;  %v1975_v61 = vld [vmem:[%s2541_s1 + $0x190] sm:$0xff]   ;;  %v1979_v1 = vld [vmem:[%s2541_s1 + $0x188] sm:$0xff]   ;;  %v1980_v2 = vld [vmem:[%s2541_s1 + $0x140] sm:$0xff]  }
  0x16   :  { %1741 = vmatprep.subr.bf16.mxu1 %v1937_v21  ;;  %v1981_v3 = vld [vmem:[%s2541_s1 + $0x1c0] sm:$0xff]   ;;  %v23_v6 = vld [vmem:[%s2542_s0 + $0x10] sm:$0xff]  ;;  %v24_v9 = vld [vmem:[%s2542_s0 + $0x18] sm:$0xff] }
  0x17   :  { %v1982_v4 = vld [vmem:[%s2541_s1 + $0x100] sm:$0xff]   ;;  %v1560_v7 = vcombine.low %v23_v6, %v23_v6  ;;  %v1561_v8 = vcombine.high %v23_v6, %v23_v6  ;;  %v1562_v10 = vcombine.low %v24_v9, %v24_v9  ;;  %v1563_v11 = vcombine.high %v24_v9, %v24_v9  ;;  %v1988_v12 = vld [vmem:[%s2541_s1 + $0x278] sm:$0xff]   ;;  %v1992_v16 = vld [vmem:[%s2541_s1 + $0x270] sm:$0xff]  }
  0x18   :  { %1720 = vmatpush3.bf16.msra.mxu0 %v1938_v22  ;;  %v1983_v5 = vld [vmem:[%s2541_s1 + $0x180] sm:$0xff]   ;;  %v1989_v13 = vld [vmem:[%s2541_s1 + $0x2f8] sm:$0xff]   ;;  %v1993_v17 = vld [vmem:[%s2541_s1 + $0x2f0] sm:$0xff]  }
  0x19   :  { %1742 = vmatpush3.bf16.msra.mxu1 %v1939_v23  ;;  %1721 = vmatprep.subr.bf16.mxu0 %v1940_v24  ;;  %v1990_v14 = vld [vmem:[%s2541_s1 + $0x238] sm:$0xff]   ;;  %v1994_v18 = vld [vmem:[%s2541_s1 + $0x230] sm:$0xff]   ;;  %v1996_v20 = vld [vmem:[%s2541_s1 + $0x268] sm:$0xff]  }
  0x1a   :  { %1743 = vmatprep.subr.bf16.mxu1 %v1941_v25  ;;  %v1991_v15 = vld [vmem:[%s2541_s1 + $0x2b8] sm:$0xff]   ;;  %v1995_v19 = vld [vmem:[%s2541_s1 + $0x2b0] sm:$0xff]   ;;  %v1997_v21 = vld [vmem:[%s2541_s1 + $0x2e8] sm:$0xff]  }
  0x1b   :  { %v1998_v22 = vld [vmem:[%s2541_s1 + $0x228] sm:$0xff]   ;;  %v2000_v24 = vld [vmem:[%s2541_s1 + $0x260] sm:$0xff]   ;;  %v2008_v32 = vld [vmem:[%s2541_s1 + $0x250] sm:$0xff]  }
  0x1c   :  { %1722 = vmatpush3.bf16.msra.mxu0 %v1942_v26  ;;  %v1999_v23 = vld [vmem:[%s2541_s1 + $0x2a8] sm:$0xff]   ;;  %v2001_v25 = vld [vmem:[%s2541_s1 + $0x2e0] sm:$0xff]   ;;  %v2009_v33 = vld [vmem:[%s2541_s1 + $0x2d0] sm:$0xff]  }
  0x1d   :  { %1744 = vmatpush3.bf16.msra.mxu1 %v1943_v27  ;;  %1723 = vmatprep.subr.bf16.mxu0 %v1944_v28  ;;  %v2002_v26 = vld [vmem:[%s2541_s1 + $0x220] sm:$0xff]   ;;  %v2004_v28 = vld [vmem:[%s2541_s1 + $0x258] sm:$0xff]   ;;  %v2011_v35 = vld [vmem:[%s2541_s1 + $0x290] sm:$0xff]  }
  0x1e   :  { %1745 = vmatprep.subr.bf16.mxu1 %v1945_v29  ;;  %v2003_v27 = vld [vmem:[%s2541_s1 + $0x2a0] sm:$0xff]   ;;  %v2005_v29 = vld [vmem:[%s2541_s1 + $0x2d8] sm:$0xff]   ;;  %v2013_v37 = vld [vmem:[%s2541_s1 + $0x2c8] sm:$0xff]  }
  0x1f   :  { %v2044_v6 = vld [vmem:[%s2541_s1 + $0x350] sm:$0xff]  }
  0x20   :  { %1724 = vmatpush3.bf16.msra.mxu0 %v1946_v30  ;;  %v2006_v30 = vld [vmem:[%s2541_s1 + $0x218] sm:$0xff]   ;;  %v2047_v9 = vld [vmem:[%s2541_s1 + $0x390] sm:$0xff]  }
  0x21   :  { %1746 = vmatpush3.bf16.msra.mxu1 %v1947_v31  ;;  %1753 = vmatprep.subr.bf16.mxu0 %v1952_v38  ;;  %v2007_v31 = vld [vmem:[%s2541_s1 + $0x298] sm:$0xff]   ;;  %v2014_v38 = vld [vmem:[%s2541_s1 + $0x208] sm:$0xff]  }
  0x22   :  { %1775 = vmatprep.subr.bf16.mxu1 %v1953_v39  ;;  %v2015_v39 = vld [vmem:[%s2541_s1 + $0x288] sm:$0xff]  }
  0x23   :  { %1149 = vmatmul.mubr.bf16.vlgmr.msra.gmra.mxu0 %v1556_v34  ;;  %v2010_v34 = vld [vmem:[%s2541_s1 + $0x210] sm:$0xff]  }
  0x24   :  { %1189 = vmatmul.mubr.bf16.vlgmr.msra.gmra.mxu1 %v1558_v36  ;;  %1754 = vmatpush3.bf16.msra.mxu0 %v1954_v40  ;;  %v2012_v36 = vld [vmem:[%s2541_s1 + $0x248] sm:$0xff]   ;;  %v2016_v40 = vld [vmem:[%s2541_s1 + $0x240] sm:$0xff]  }
  0x25   :  { %1776 = vmatpush3.bf16.msra.mxu1 %v1955_v41  ;;  %1755 = vmatprep.subr.bf16.mxu0 %v1956_v42  ;;  %v2017_v41 = vld [vmem:[%s2541_s1 + $0x2c0] sm:$0xff]  }
  0x26   :  { %1777 = vmatprep.subr.bf16.mxu1 %v1957_v43  ;;  %1228 = vmatprep.mubr.bf16.mxu0 %v1561_v8  ;;  %v2018_v42 = vld [vmem:[%s2541_s1 + $0x200] sm:$0xff]   ;;  %v2046_v8 = vld [vmem:[%s2541_s1 + $0x310] sm:$0xff]  }
  0x27   :  { %1268 = vmatprep.mubr.bf16.mxu1 %v1563_v11  ;;  %v2019_v43 = vld [vmem:[%s2541_s1 + $0x280] sm:$0xff]   ;;  %v2049_v11 = vld [vmem:[%s2541_s1 + $0x3c8] sm:$0xff]  }
  0x28   :  { %1756 = vmatpush3.bf16.msra.mxu0 %v1958_v44  ;;  %v25_v44 = vld [vmem:[%s2542_s0 + $0x20] sm:$0xff] }
  0x29   :  { %1778 = vmatpush3.bf16.msra.mxu1 %v1959_v45  ;;  %1757 = vmatprep.subr.bf16.mxu0 %v1960_v46  ;;  %v26_v45 = vld [vmem:[%s2542_s0 + $0x28] sm:$0xff]  ;;  %v1564_v46 = vcombine.low %v25_v44, %v25_v44 }
  0x2a   :  { %1779 = vmatprep.subr.bf16.mxu1 %v1961_v47  ;;  %v1565_v47 = vcombine.high %v25_v44, %v25_v44 }
  0x2c   :  { %1758 = vmatpush3.bf16.msra.mxu0 %v1962_v48  ;;  %v1566_v48 = vcombine.low %v26_v45, %v26_v45 }
  0x2d   :  { %1780 = vmatpush3.bf16.msra.mxu1 %v1963_v49  ;;  %1759 = vmatprep.subr.bf16.mxu0 %v1964_v50  ;;  %v1567_v49 = vcombine.high %v26_v45, %v26_v45  ;;  %v2024_v50 = vld [vmem:[%s2541_s1 + $0x378] sm:$0xff]  }
  0x2e   :  { %1781 = vmatprep.subr.bf16.mxu1 %v1965_v51  ;;  %v2025_v51 = vld [vmem:[%s2541_s1 + $0x3f8] sm:$0xff]  }
  0x30   :  { %1760 = vmatpush3.bf16.msra.mxu0 %v1966_v52  ;;  %v2026_v52 = vld [vmem:[%s2541_s1 + $0x338] sm:$0xff]  }
  0x31   :  { %1782 = vmatpush3.bf16.msra.mxu1 %v1967_v53  ;;  %1761 = vmatprep.subr.bf16.mxu0 %v1968_v54  ;;  %v2027_v53 = vld [vmem:[%s2541_s1 + $0x3b8] sm:$0xff]   ;;  %v2028_v54 = vld [vmem:[%s2541_s1 + $0x370] sm:$0xff]  }
  0x32   :  { %1783 = vmatprep.subr.bf16.mxu1 %v1969_v55  ;;  %v2029_v55 = vld [vmem:[%s2541_s1 + $0x3f0] sm:$0xff]  }
  0x34   :  { %1762 = vmatpush3.bf16.msra.mxu0 %v1970_v56  ;;  %v2030_v56 = vld [vmem:[%s2541_s1 + $0x330] sm:$0xff]  }
  0x35   :  { %1784 = vmatpush3.bf16.msra.mxu1 %v1971_v57  ;;  %1763 = vmatprep.subr.bf16.mxu0 %v1972_v58  ;;  %v2031_v57 = vld [vmem:[%s2541_s1 + $0x3b0] sm:$0xff]   ;;  %v2032_v58 = vld [vmem:[%s2541_s1 + $0x368] sm:$0xff]  }
  0x36   :  { %1785 = vmatprep.subr.bf16.mxu1 %v1973_v59  ;;  %v2033_v59 = vld [vmem:[%s2541_s1 + $0x3e8] sm:$0xff]  }
  0x38   :  { %1764 = vmatpush3.bf16.msra.mxu0 %v1974_v60  ;;  %v2034_v60 = vld [vmem:[%s2541_s1 + $0x328] sm:$0xff]  }
  0x39   :  { %1786 = vmatpush3.bf16.msra.mxu1 %v1975_v61  ;;  %1765 = vmatprep.subr.bf16.mxu0 %v1976_v62  ;;  %v2035_v61 = vld [vmem:[%s2541_s1 + $0x3a8] sm:$0xff]   ;;  %v2036_v62 = vld [vmem:[%s2541_s1 + $0x360] sm:$0xff]  }
  0x3a   :  { %1787 = vmatprep.subr.bf16.mxu1 %v1977_v63  ;;  %v2037_v63 = vld [vmem:[%s2541_s1 + $0x3e0] sm:$0xff]  }
  0x3c   :  { %1766 = vmatpush3.bf16.msra.mxu0 %v1978_v0  ;;  %v2038_v0 = vld [vmem:[%s2541_s1 + $0x320] sm:$0xff]  }
  0x3d   :  { %1788 = vmatpush3.bf16.msra.mxu1 %v1979_v1  ;;  %1767 = vmatprep.subr.bf16.mxu0 %v1980_v2  ;;  %v2039_v1 = vld [vmem:[%s2541_s1 + $0x3a0] sm:$0xff]   ;;  %v2040_v2 = vld [vmem:[%s2541_s1 + $0x358] sm:$0xff]  }
  0x3e   :  { %1789 = vmatprep.subr.bf16.mxu1 %v1981_v3  ;;  %v2041_v3 = vld [vmem:[%s2541_s1 + $0x3d8] sm:$0xff]  }
  0x40   :  { %1768 = vmatpush3.bf16.msra.mxu0 %v1982_v4  ;;  %v2042_v4 = vld [vmem:[%s2541_s1 + $0x318] sm:$0xff]  }
  0x41   :  { %1790 = vmatpush3.bf16.msra.mxu1 %v1983_v5  ;;  %1797 = vmatprep.subr.bf16.mxu0 %v1988_v12  ;;  %v2043_v5 = vld [vmem:[%s2541_s1 + $0x398] sm:$0xff]   ;;  %v2050_v12 = vld [vmem:[%s2541_s1 + $0x308] sm:$0xff]  }
  0x42   :  { %1819 = vmatprep.subr.bf16.mxu1 %v1989_v13  ;;  %v2051_v13 = vld [vmem:[%s2541_s1 + $0x388] sm:$0xff]  }
  0x43   :  { %1229 = vmatmul.mubr.bf16.vlgmr.msra.gmra.mxu0 %v1560_v7  ;;  %v2045_v7 = vld [vmem:[%s2541_s1 + $0x3d0] sm:$0xff]  }
  0x44   :  { %1269 = vmatmul.mubr.bf16.vlgmr.msra.gmra.mxu1 %v1562_v10  ;;  %1798 = vmatpush3.bf16.msra.mxu0 %v1990_v14  ;;  %v2048_v10 = vld [vmem:[%s2541_s1 + $0x348] sm:$0xff]   ;;  %v2052_v14 = vld [vmem:[%s2541_s1 + $0x340] sm:$0xff]  }
  0x45   :  { %1820 = vmatpush3.bf16.msra.mxu1 %v1991_v15  ;;  %1799 = vmatprep.subr.bf16.mxu0 %v1992_v16  ;;  %v2053_v15 = vld [vmem:[%s2541_s1 + $0x3c0] sm:$0xff]  }
  0x46   :  { %1821 = vmatprep.subr.bf16.mxu1 %v1993_v17  ;;  %1308 = vmatprep.mubr.bf16.mxu0 %v1565_v47  ;;  %v2054_v16 = vld [vmem:[%s2541_s1 + $0x300] sm:$0xff]  }
  0x47   :  { %1348 = vmatprep.mubr.bf16.mxu1 %v1567_v49  ;;  %v2055_v17 = vld [vmem:[%s2541_s1 + $0x380] sm:$0xff]  }
  0x48   :  { %1800 = vmatpush3.bf16.msra.mxu0 %v1994_v18  ;;  %v27_v18 = vld [vmem:[%s2542_s0 + $0x30] sm:$0xff] }
  0x49   :  { %1822 = vmatpush3.bf16.msra.mxu1 %v1995_v19  ;;  %1801 = vmatprep.subr.bf16.mxu0 %v1996_v20  ;;  %v28_v19 = vld [vmem:[%s2542_s0 + $0x38] sm:$0xff]  ;;  %v1568_v20 = vcombine.low %v27_v18, %v27_v18 }
  0x4a   :  { %1823 = vmatprep.subr.bf16.mxu1 %v1997_v21  ;;  %v1569_v21 = vcombine.high %v27_v18, %v27_v18 }
  0x4c   :  { %1802 = vmatpush3.bf16.msra.mxu0 %v1998_v22  ;;  %v1570_v22 = vcombine.low %v28_v19, %v28_v19 }
  0x4d   :  { %1824 = vmatpush3.bf16.msra.mxu1 %v1999_v23  ;;  %1803 = vmatprep.subr.bf16.mxu0 %v2000_v24  ;;  %v1571_v23 = vcombine.high %v28_v19, %v28_v19  ;;  %v2068_v24 = vmov 0.0  }
  0x4e   :  { %1825 = vmatprep.subr.bf16.mxu1 %v2001_v25  ;;  %v2060_v25 = vld [vmem:[%s2543_s3 + $0x38] sm:$0xff]  }
  0x50   :  { %1804 = vmatpush3.bf16.msra.mxu0 %v2002_v26  ;;  %v2061_v26 = vld [vmem:[%s2543_s3 + $0x30] sm:$0xff]  }
  0x51   :  { %1826 = vmatpush3.bf16.msra.mxu1 %v2003_v27  ;;  %1805 = vmatprep.subr.bf16.mxu0 %v2004_v28  ;;  %v2062_v27 = vld [vmem:[%s2543_s3 + $0x28] sm:$0xff]   ;;  %v2063_v28 = vld [vmem:[%s2543_s3 + $0x20] sm:$0xff]  }
  0x52   :  { %1827 = vmatprep.subr.bf16.mxu1 %v2005_v29  ;;  %v2064_v29 = vld [vmem:[%s2543_s3 + $0x18] sm:$0xff]  }
  0x54   :  { %1806 = vmatpush3.bf16.msra.mxu0 %v2006_v30  ;;  %v2065_v30 = vld [vmem:[%s2543_s3 + $0x10] sm:$0xff]  }
  0x55   :  { %1828 = vmatpush3.bf16.msra.mxu1 %v2007_v31  ;;  %1807 = vmatprep.subr.bf16.mxu0 %v2008_v32  ;;  %v2066_v31 = vld [vmem:[%s2543_s3 + $0x8] sm:$0xff]   ;;  %v2067_v32 = vld [vmem:[%s2543_s3] sm:$0xff]  }
  0x56   :  { %1829 = vmatprep.subr.bf16.mxu1 %v2009_v33 }
  0x58   :  { %1808 = vmatpush3.bf16.msra.mxu0 %v2010_v34 }
  0x59   :  { %1830 = vmatpush3.bf16.msra.mxu1 %v2011_v35  ;;  %1809 = vmatprep.subr.bf16.mxu0 %v2012_v36  ;;  %v1555_v35 = vld [vmem:[%s2544_s2] ss:$0 sm:$0xff] }
  0x5a   :  { %1831 = vmatprep.subr.bf16.mxu1 %v2013_v37 }
  0x5c   :  { %1810 = vmatpush3.bf16.msra.mxu0 %v2014_v38 }
  0x5d   :  { %1832 = vmatpush3.bf16.msra.mxu1 %v2015_v39  ;;  %1811 = vmatprep.subr.bf16.mxu0 %v2016_v40 }
  0x5e   :  { %1833 = vmatprep.subr.bf16.mxu1 %v2017_v41 }
  0x60   :  { %1812 = vmatpush3.bf16.msra.mxu0 %v2018_v42 }
  0x61   :  { %1834 = vmatpush3.bf16.msra.mxu1 %v2019_v43  ;;  %1841 = vmatprep.subr.bf16.mxu0 %v2024_v50 }
  0x62   :  { %1863 = vmatprep.subr.bf16.mxu1 %v2025_v51 }
  0x63   :  { %1309 = vmatmul.mubr.bf16.vlgmr.msra.gmra.mxu0 %v1564_v46 }
  0x64   :  { %1349 = vmatmul.mubr.bf16.vlgmr.msra.gmra.mxu1 %v1566_v48  ;;  %1842 = vmatpush3.bf16.msra.mxu0 %v2026_v52 }
  0x65   :  { %1864 = vmatpush3.bf16.msra.mxu1 %v2027_v53  ;;  %1843 = vmatprep.subr.bf16.mxu0 %v2028_v54 }
  0x66   :  { %1865 = vmatprep.subr.bf16.mxu1 %v2029_v55  ;;  %1388 = vmatprep.mubr.bf16.mxu0 %v1569_v21 }
  0x67   :  { %1428 = vmatprep.mubr.bf16.mxu1 %v1571_v23 }
  0x68   :  { %1844 = vmatpush3.bf16.msra.mxu0 %v2030_v56 }
  0x69   :  { %1866 = vmatpush3.bf16.msra.mxu1 %v2031_v57  ;;  %1845 = vmatprep.subr.bf16.mxu0 %v2032_v58 }
  0x6a   :  { %1867 = vmatprep.subr.bf16.mxu1 %v2033_v59 }
  0x6c   :  { %1846 = vmatpush3.bf16.msra.mxu0 %v2034_v60 }
  0x6d   :  { %1868 = vmatpush3.bf16.msra.mxu1 %v2035_v61  ;;  %1847 = vmatprep.subr.bf16.mxu0 %v2036_v62 }
  0x6e   :  { %1869 = vmatprep.subr.bf16.mxu1 %v2037_v63 }
  0x70   :  { %1848 = vmatpush3.bf16.msra.mxu0 %v2038_v0 }
  0x71   :  { %1870 = vmatpush3.bf16.msra.mxu1 %v2039_v1  ;;  %1849 = vmatprep.subr.bf16.mxu0 %v2040_v2 }
  0x72   :  { %1871 = vmatprep.subr.bf16.mxu1 %v2041_v3 }
  0x74   :  { %1850 = vmatpush3.bf16.msra.mxu0 %v2042_v4 }
  0x75   :  { %1872 = vmatpush3.bf16.msra.mxu1 %v2043_v5  ;;  %1851 = vmatprep.subr.bf16.mxu0 %v2044_v6 }
  0x76   :  { %1873 = vmatprep.subr.bf16.mxu1 %v2045_v7 }
  0x78   :  { %1852 = vmatpush3.bf16.msra.mxu0 %v2046_v8 }
  0x79   :  { %1874 = vmatpush3.bf16.msra.mxu1 %v2047_v9  ;;  %1853 = vmatprep.subr.bf16.mxu0 %v2048_v10 }
  0x7a   :  { %1875 = vmatprep.subr.bf16.mxu1 %v2049_v11 }
  0x7c   :  { %1854 = vmatpush3.bf16.msra.mxu0 %v2050_v12 }
  0x7d   :  { %1876 = vmatpush3.bf16.msra.mxu1 %v2051_v13  ;;  %1855 = vmatprep.subr.bf16.mxu0 %v2052_v14 }
  0x7e   :  { %1877 = vmatprep.subr.bf16.mxu1 %v2053_v15 }
  0x80   :  { %1856 = vmatpush3.bf16.msra.mxu0 %v2054_v16 }
  0x81   :  { %1878 = vmatpush3.bf16.msra.mxu1 %v2055_v17  ;;  %1894 = vmatprep.subr.bf16.mxu0 %v2068_v24 }
  0x83   :  { %1389 = vmatmul.mubr.bf16.vlgmr.msra.gmra.mxu0 %v1568_v20  ;;  %v1700_v20 = vld [vmem:[%s2545_s4] ss:$0 sm:$0xff] }
  0x84   :  { %1429 = vmatmul.mubr.bf16.vlgmr.msra.gmra.mxu1 %v1570_v22  ;;  %1895 = vmatpush3.bf16.msra.mxu0 %v2060_v25 }
  0x85   :  { %1896 = vmatprep.subr.bf16.mxu0 %v2068_v24  ;;  %1910 = vmatprep.mubr.msk.bf16.mxu0 %vm2069_vm0, %v2068_v24 }
  0x88   :  { %1897 = vmatpush3.bf16.msra.mxu0 %v2061_v26 }
  0x89   :  { %1898 = vmatprep.subr.bf16.mxu0 %v2068_v24 }
  0x8c   :  { %1899 = vmatpush3.bf16.msra.mxu0 %v2062_v27 }
  0x8d   :  { %1900 = vmatprep.subr.bf16.mxu0 %v2068_v24 }
  0x90   :  { %1901 = vmatpush3.bf16.msra.mxu0 %v2063_v28 }
  0x91   :  { %1902 = vmatprep.subr.bf16.mxu0 %v2068_v24 }
  0x94   :  { %1903 = vmatpush3.bf16.msra.mxu0 %v2064_v29 }
  0x95   :  { %1904 = vmatprep.subr.bf16.mxu0 %v2068_v24 }
  0x98   :  { %1905 = vmatpush3.bf16.msra.mxu0 %v2065_v30 }
  0x99   :  { %1906 = vmatprep.subr.bf16.mxu0 %v2068_v24 }
  0x9c   :  { %1907 = vmatpush3.bf16.msra.mxu0 %v2066_v31 }
  0x9d   :  { %1908 = vmatprep.subr.bf16.mxu0 %v2068_v24 }
  0xa0   :  { %1909 = vmatpush3.bf16.msra.mxu0 %v2067_v32 }
  0xe3   :  { %v1725_v33 = vpop.f32.mrf.mxu0 }
  0xe4   :  { %v1747_v34 = vpop.f32.mrf.mxu1 }
  0xe5   :  { %v1726_v36 = vpop.f32.mrf.mxu0 }
  0xe6   :  { %v1748_v37 = vpop.f32.mrf.mxu1  ;;  %v1727_v38 = vadd.f32 %v1726_v36, %v1725_v33 }
  0xe7   :  { %v1749_v39 = vadd.f32 %v1748_v37, %v1747_v34  ;;  %v1728_v40 = vpop.f32.mrf.mxu0 }
  0xe8   :  { %v1750_v41 = vpop.f32.mrf.mxu1  ;;  %v1151_v42 = vadd.f32 %v1727_v38, %v1555_v35 }
  0xe9   :  { %v1729_v43 = vpop.f32.mrf.mxu0 }
  0xea   :  { %v1751_v44 = vpop.f32.mrf.mxu1  ;;  %v1191_v45 = vadd.f32 %v1749_v39, %v1151_v42 }
 0x103   :  { %v1769_v46 = vpop.f32.mrf.mxu0 }
 0x104   :  { %v1791_v47 = vpop.f32.mrf.mxu1 }
 0x105   :  { %v1770_v48 = vpop.f32.mrf.mxu0 }
 0x106   :  { %v1792_v49 = vpop.f32.mrf.mxu1  ;;  %v1771_v62 = vadd.f32 %v1770_v48, %v1769_v46 }
 0x107   :  { %v1772_v50 = vpop.f32.mrf.mxu0  ;;  %v1793_v0 = vadd.f32 %v1792_v49, %v1791_v47 }
 0x108   :  { %v1794_v51 = vpop.f32.mrf.mxu1  ;;  %v1231_v63 = vadd.f32 %v1771_v62, %v1191_v45 }
 0x109   :  { %v1773_v52 = vpop.f32.mrf.mxu0 }
 0x10a   :  { %v1795_v53 = vpop.f32.mrf.mxu1  ;;  %v1271_v2 = vadd.f32 %v1793_v0, %v1231_v63 }
 0x123   :  { %v1813_v54 = vpop.f32.mrf.mxu0 }
 0x124   :  { %v1835_v55 = vpop.f32.mrf.mxu1 }
 0x125   :  { %v1814_v56 = vpop.f32.mrf.mxu0 }
 0x126   :  { %v1836_v57 = vpop.f32.mrf.mxu1  ;;  %v1815_v1 = vadd.f32 %v1814_v56, %v1813_v54 }
 0x127   :  { %v1816_v58 = vpop.f32.mrf.mxu0  ;;  %v1837_v4 = vadd.f32 %v1836_v57, %v1835_v55 }
 0x128   :  { %v1838_v59 = vpop.f32.mrf.mxu1  ;;  %v1311_v3 = vadd.f32 %v1815_v1, %v1271_v2 }
 0x129   :  { %v1817_v60 = vpop.f32.mrf.mxu0 }
 0x12a   :  { %v1839_v61 = vpop.f32.mrf.mxu1  ;;  %v1351_v8 = vadd.f32 %v1837_v4, %v1311_v3 }
 0x143   :  { %v1857_v5 = vpop.f32.mrf.mxu0 }
 0x144   :  { %v1879_v6 = vpop.f32.mrf.mxu1 }
 0x145   :  { %v1858_v7 = vpop.f32.mrf.mxu0 }
 0x146   :  { %v1859_v9 = vadd.f32 %v1858_v7, %v1857_v5  ;;  %v1880_v10 = vpop.f32.mrf.mxu1 }
 0x147   :  { %v1860_v11 = vpop.f32.mrf.mxu0  ;;  %v1881_v13 = vadd.f32 %v1880_v10, %v1879_v6 }
 0x148   :  { %v1391_v12 = vadd.f32 %v1859_v9, %v1351_v8  ;;  %v1882_v14 = vpop.f32.mrf.mxu1 }
 0x149   :  { %v1861_v15 = vpop.f32.mrf.mxu0 }
 0x14a   :  { %v1431_v16 = vadd.f32 %v1881_v13, %v1391_v12  ;;  %v1883_v17 = vpop.f32.mrf.mxu1 }
 0x14c   :  { %v1436_v18 = vmax.f32 %v1431_v16, 0.0 }
 0x14e   :  { %v1437_v19 = vpack.c.bf16 %v1436_v18, %v1436_v18 }
 0x150   :  { %1911 = vmatmul.mubr.bf16.vlgmr.msra.gmra.mxu0 %v1437_v19 }
 0x210   :  { %v1543_v21 = vpop.f32.mrf.mxu0 }
 0x211   :  { %v1544_v22 = vadd.f32 %v1700_v20, %v1543_v21 }
 0x212   :  { %v1912_v23 = vpop.f32.mrf.mxu0 }
 0x213   :  { %v1549_v24 = vmax.f32 %v1544_v22, 0.0 }
 0x214   :  { %v1546_v25 = vpop.f32.mrf.mxu0 }
 0x215   :  { %1550 = vst [vmem:[%s2546_s5] sm:$0xff] %v1549_v24 }
 0x216   :  { %v1913_v26 = vpop.f32.mrf.mxu0 }

</bundles_post_ra>
